<compile_context>
chip_gen: v6e
topology: v6e:2x2x1
jax: 0.10.0
libtpu: 0.0.40
codegen_flags: <defaults>
</compile_context>

<pallas_src>
import functools

import jax
import jax.numpy as jnp
from jax import lax
from jax.experimental import pallas as pl
from jax.experimental.pallas import tpu as pltpu

SIGMA = 10.0
_SIGMA_COLOR = -1.0 / (2.0 * SIGMA * SIGMA)

_MAT = ((0.257, -0.148, 0.439),
        (0.564, -0.291, -0.368),
        (0.098, 0.439, -0.071))
_BIAS = (16.0 / 255.0, 128.0 / 255.0, 128.0 / 255.0)

# The 24 torch terms come in identical pairs (w1==w2, ...), so 12 unique
# (dy, dx) pixel offsets; each contributes 2 * mean(term).
_OFFSETS = ((1, 0), (0, 1), (1, 1), (1, -1),
            (2, 0), (0, 2), (2, 1), (2, -1),
            (1, 2), (1, -2), (2, 2), (2, -2))

_OUT_SUB, _OUT_LANE = 8, 128   # lane-dense per-batch partial-loss output block


def _shift(a, d, axis):
    """result[i] = a[(i + d) mod n] along `axis` via an XLU rotate (free slot)."""
    n = a.shape[axis]
    d = d % n
    if d == 0:
        return a
    return pltpu.roll(a, shift=(n - d) % n, axis=axis)


def _smooth_fused_kernel(x_ref, o_ref, out_ref, *, batch, height):
    H = height
    x = x_ref[0].astype(jnp.float32)   # (3*H, W): RGB input, (C, H) merged on sublanes
    o = o_ref[0].astype(jnp.float32)   # (Co*H, W): network output, (C, H) merged
    R, W = x.shape
    Co = o.shape[0] // H

    # ------------- fused rgb -> yCbCr (exact torch `view(-1,3).mm(mat)+bias`) -----------
    # Per-batch row-major flat index p = r*W + w.  The torch view groups THREE
    # CONSECUTIVE FLAT ELEMENTS into one triplet, so the 3x3 matrix acts on
    # (F[p-j], F[p-j+1], F[p-j+2]) with j = p % 3.
    row_i = lax.broadcasted_iota(jnp.int32, (R, W), 0)
    col_i = lax.broadcasted_iota(jnp.int32, (R, W), 1)
    # j = p % 3, computed in f32 (exact at these magnitudes; avoids vector int rem).
    p_f = (row_i * W + col_i).astype(jnp.float32)
    j_f = p_f - 3.0 * jnp.floor(p_f * (1.0 / 3.0))
    j0 = j_f < 0.5
    j1 = (j_f >= 0.5) & (j_f < 1.5)
    j2 = j_f >= 1.5

    def flat_shift(d):
        """F[p + d] in row-major flat order (d in [-2, 2])."""
        if d == 0:
            return x
        lane = _shift(x, d, axis=1)                        # same-row neighbour (mod W)
        fixed = _shift(lane, 1 if d > 0 else -1, axis=0)   # neighbour that crossed a row
        if d > 0:
            return jnp.where(col_i < W - d, lane, fixed)
        return jnp.where(col_i >= -d, lane, fixed)

    s_m2, s_m1, s_p1, s_p2 = (flat_shift(d) for d in (-2, -1, 1, 2))
    m, b = _MAT, _BIAS
    y = (x * jnp.where(j0, m[0][0], jnp.where(j1, m[1][1], m[2][2]))
         + s_p1 * jnp.where(j0, m[1][0], jnp.where(j1, m[2][1], 0.0))
         + s_p2 * jnp.where(j0, m[2][0], 0.0)
         + s_m1 * jnp.where(j1, m[0][1], jnp.where(j2, m[1][2], 0.0))
         + s_m2 * jnp.where(j2, m[0][2], 0.0)
         + jnp.where(j0, b[0], jnp.where(j1, b[1], b[2])))   # (3*H, W) yCbCr, VMEM-only

    # ------------- 12 shifted-difference terms, one deferred reduction -------------
    hh = lax.broadcasted_iota(jnp.int32, (H, W), 0)
    ww = lax.broadcasted_iota(jnp.int32, (H, W), 1)

    # Sub-lane (row) shifts are shared across all dx variants of the same dy.
    y_dy = {0: y, 1: _shift(y, 1, axis=0), 2: _shift(y, 2, axis=0)}
    o_dy = {0: o, 1: _shift(o, 1, axis=0), 2: _shift(o, 2, axis=0)}

    acc = jnp.zeros((H, W), jnp.float32)
    for dy, dx in _OFFSETS:
        y_s = _shift(y_dy[dy], dx, axis=1)        # == y[r+dy, w+dx] on the valid region
        o_s = _shift(o_dy[dy], dx, axis=1)
        dyc = y_s - y
        dou = o_s - o
        sq = dyc * dyc
        sq_sum = sq[0:H] + sq[H:2 * H] + sq[2 * H:3 * H]      # sum over yCbCr channels
        ab = jnp.abs(dou)
        ab_sum = ab[0:H]
        for c in range(1, Co):                                 # L1 norm over channels
            ab_sum = ab_sum + ab[c * H:(c + 1) * H]
        wgt = jnp.exp(sq_sum * _SIGMA_COLOR)                   # EUP transcendental
        lane_ok = (ww < W - dx) if dx >= 0 else (ww >= -dx)
        valid = (hh < H - dy) & lane_ok
        count = batch * (H - dy) * (W - abs(dx))
        # Each unique offset appears twice in the torch loss -> factor 2; the mask
        # carries 2/count, so no per-offset mean/reduction is needed.
        acc = acc + jnp.where(valid, 2.0 / count, 0.0) * (wgt * ab_sum)

    partial = jnp.sum(acc)                                     # single XLU reduction
    out_ref[...] = jnp.full((1, _OUT_SUB, _OUT_LANE), partial, jnp.float32)


def smooth_loss(input_im, output_im):
    B, Ci, H, W = input_im.shape
    assert Ci == 3, "rgb2yCbCr requires a 3-channel RGB input"
    Bo, Co, Ho, Wo = output_im.shape
    assert (Bo, Ho, Wo) == (B, H, W)

    # Free (bitcast) views: merge (C, H) onto the sublane axis -> lane-dense W; the
    # torch row-major flatten order is preserved for the fused colour transform.
    x2 = input_im.reshape(B, 3 * H, W)
    o2 = output_im.reshape(B, Co * H, W)       # NOTE: no wrapper dtype cast (done in VMEM)

    kernel = functools.partial(_smooth_fused_kernel, batch=B, height=H)
    partials = pl.pallas_call(
        kernel,
        out_shape=jax.ShapeDtypeStruct((B, _OUT_SUB, _OUT_LANE), jnp.float32),
        grid=(B,),
        in_specs=[
            pl.BlockSpec((1, 3 * H, W), lambda bi: (bi, 0, 0)),
            pl.BlockSpec((1, Co * H, W), lambda bi: (bi, 0, 0)),
        ],
        out_specs=pl.BlockSpec((1, _OUT_SUB, _OUT_LANE), lambda bi: (bi, 0, 0)),
        compiler_params=pltpu.CompilerParams(
            dimension_semantics=("parallel",),        # megacore split on v7x
            vmem_limit_bytes=32 * 1024 * 1024,
        ),
    )(x2, o2)
    return jnp.sum(partials[:, 0, 0])                 # tiny final sum over batch


# --------------------------- pure-JAX reference (for checking) ---------------------------
def _shifted_diff(arr, dy, dx):
    h, w = arr.shape[2], arr.shape[3]
    if dx >= 0:
        return arr[:, :, dy:h, dx:w] - arr[:, :, 0:h - dy, 0:w - dx]
    return arr[:, :, dy:h, 0:w + dx] - arr[:, :, 0:h - dy, -dx:w]


def _reference_smooth_loss(input_im, output_im):
    """Pure-JAX mirror of the torch module."""
    bsz, c, h, w = input_im.shape
    mat = jnp.array(_MAT, dtype=jnp.float32)
    bias = jnp.array(_BIAS, dtype=jnp.float32)
    flat = input_im.reshape(-1, 3).astype(jnp.float32)
    # explicit FMAs (avoid TPU matmul default-precision noise in the reference)
    y_flat = flat[:, 0:1] * mat[0] + flat[:, 1:2] * mat[1] + flat[:, 2:3] * mat[2] + bias
    y = y_flat.reshape(bsz, c, h, w)
    o = output_im.astype(jnp.float32)
    total = jnp.float32(0.0)
    for dy, dx in _OFFSETS:
        dycbcr = _shifted_diff(y, dy, dx)
        dout = _shifted_diff(o, dy, dx)
        wgt = jnp.exp(jnp.sum(dycbcr ** 2, axis=1, keepdims=True) * _SIGMA_COLOR)
        pg = wgt * jnp.sum(jnp.abs(dout), axis=1, keepdims=True)
        total = total + 2.0 * jnp.mean(pg)
    return total


if __name__ == "__main__":
    key = jax.random.PRNGKey(0)
    k1, k2 = jax.random.split(key)
    # W = 128 keeps the lane axis dense (perf-review item); shapes stay small.
    B, C, H, W = 2, 3, 16, 128
    x = jax.random.uniform(k1, (B, C, H, W), dtype=jnp.float32)       # RGB in [0, 1)
    y_net = jax.random.uniform(k2, (B, C, H, W), dtype=jnp.float32)   # network output

    loss = jax.block_until_ready(jax.jit(smooth_loss)(x, y_net))
    ref = _reference_smooth_loss(x, y_net)
    assert jnp.allclose(loss, ref, rtol=1e-4, atol=1e-5), (loss, ref)
    print("KERNEL_OK")
</pallas_src>

<mosaic_0001>
module attributes {stable_mosaic.version = 11 : i64} {
  func.func @_smooth_fused_kernel(%arg0: i32, %arg1: memref<1x48x128xf32, #tpu.memory_space<vmem>>, %arg2: memref<1x48x128xf32, #tpu.memory_space<vmem>>, %arg3: memref<1x8x128xf32, #tpu.memory_space<vmem>>) attributes {dimension_semantics = [#tpu.dimension_semantics<parallel>], iteration_bounds = array<i64: 2>, scalar_prefetch = 0 : i64, scratch_operands = 0 : i64, tpu.core_type = #tpu.core_type<tc>, window_params = [{transform_indices = @transform_0, window_bounds = array<i64: 1, 48, 128>}, {transform_indices = @transform_1, window_bounds = array<i64: 1, 48, 128>}, {transform_indices = @transform_2, window_bounds = array<i64: 1, 8, 128>}]} {
    %c0 = arith.constant 0 : index
    %c0_0 = arith.constant 0 : index
    %c0_1 = arith.constant 0 : index
    %0 = vector.load %arg1[%c0, %c0_0, %c0_1] : memref<1x48x128xf32, #tpu.memory_space<vmem>>, vector<1x48x128xf32>
    %1 = vector.shape_cast %0 : vector<1x48x128xf32> to vector<48x128xf32>
    %c0_2 = arith.constant 0 : index
    %c0_3 = arith.constant 0 : index
    %c0_4 = arith.constant 0 : index
    %2 = vector.load %arg2[%c0_2, %c0_3, %c0_4] : memref<1x48x128xf32, #tpu.memory_space<vmem>>, vector<1x48x128xf32>
    %3 = vector.shape_cast %2 : vector<1x48x128xf32> to vector<48x128xf32>
    %4 = tpu.iota {dimensions = array<i32: 0>} : vector<48x128xi32>
    %5 = tpu.iota {dimensions = array<i32: 1>} : vector<48x128xi32>
    %c128_i32 = arith.constant 128 : i32
    %6 = vector.broadcast %c128_i32 : i32 to vector<48x128xi32>
    %7 = arith.muli %4, %6 : vector<48x128xi32>
    %8 = arith.addi %7, %5 : vector<48x128xi32>
    %9 = arith.sitofp %8 : vector<48x128xi32> to vector<48x128xf32>
    %cst = arith.constant 0.333333343 : f32
    %10 = vector.broadcast %cst : f32 to vector<48x128xf32>
    %11 = arith.mulf %9, %10 : vector<48x128xf32>
    %12 = math.floor %11 : vector<48x128xf32>
    %cst_5 = arith.constant 3.000000e+00 : f32
    %13 = vector.broadcast %cst_5 : f32 to vector<48x128xf32>
    %14 = arith.mulf %13, %12 : vector<48x128xf32>
    %15 = arith.subf %9, %14 : vector<48x128xf32>
    %cst_6 = arith.constant 5.000000e-01 : f32
    %16 = vector.broadcast %cst_6 : f32 to vector<48x128xf32>
    %17 = arith.cmpf olt, %15, %16 : vector<48x128xf32>
    %cst_7 = arith.constant 5.000000e-01 : f32
    %18 = vector.broadcast %cst_7 : f32 to vector<48x128xf32>
    %19 = arith.cmpf oge, %15, %18 : vector<48x128xf32>
    %cst_8 = arith.constant 1.500000e+00 : f32
    %20 = vector.broadcast %cst_8 : f32 to vector<48x128xf32>
    %21 = arith.cmpf olt, %15, %20 : vector<48x128xf32>
    %22 = arith.andi %19, %21 : vector<48x128xi1>
    %cst_9 = arith.constant 1.500000e+00 : f32
    %23 = vector.broadcast %cst_9 : f32 to vector<48x128xf32>
    %24 = arith.cmpf oge, %15, %23 : vector<48x128xf32>
    %c2_i32 = arith.constant 2 : i32
    %25 = tpu.dynamic_rotate %1 by %c2_i32 dim 1 : vector<48x128xf32>, i32 -> vector<48x128xf32>
    %c1_i32 = arith.constant 1 : i32
    %26 = tpu.dynamic_rotate %25 by %c1_i32 dim 0 : vector<48x128xf32>, i32 -> vector<48x128xf32>
    %c2_i32_10 = arith.constant 2 : i32
    %27 = vector.broadcast %c2_i32_10 : i32 to vector<48x128xi32>
    %28 = arith.cmpi sge, %5, %27 : vector<48x128xi32>
    %29 = arith.select %28, %25, %26 : vector<48x128xi1>, vector<48x128xf32>
    %c1_i32_11 = arith.constant 1 : i32
    %30 = tpu.dynamic_rotate %1 by %c1_i32_11 dim 1 : vector<48x128xf32>, i32 -> vector<48x128xf32>
    %c1_i32_12 = arith.constant 1 : i32
    %31 = tpu.dynamic_rotate %30 by %c1_i32_12 dim 0 : vector<48x128xf32>, i32 -> vector<48x128xf32>
    %c1_i32_13 = arith.constant 1 : i32
    %32 = vector.broadcast %c1_i32_13 : i32 to vector<48x128xi32>
    %33 = arith.cmpi sge, %5, %32 : vector<48x128xi32>
    %34 = arith.select %33, %30, %31 : vector<48x128xi1>, vector<48x128xf32>
    %c127_i32 = arith.constant 127 : i32
    %35 = tpu.dynamic_rotate %1 by %c127_i32 dim 1 : vector<48x128xf32>, i32 -> vector<48x128xf32>
    %c47_i32 = arith.constant 47 : i32
    %36 = tpu.dynamic_rotate %35 by %c47_i32 dim 0 : vector<48x128xf32>, i32 -> vector<48x128xf32>
    %c127_i32_14 = arith.constant 127 : i32
    %37 = vector.broadcast %c127_i32_14 : i32 to vector<48x128xi32>
    %38 = arith.cmpi slt, %5, %37 : vector<48x128xi32>
    %39 = arith.select %38, %35, %36 : vector<48x128xi1>, vector<48x128xf32>
    %c126_i32 = arith.constant 126 : i32
    %40 = tpu.dynamic_rotate %1 by %c126_i32 dim 1 : vector<48x128xf32>, i32 -> vector<48x128xf32>
    %c47_i32_15 = arith.constant 47 : i32
    %41 = tpu.dynamic_rotate %40 by %c47_i32_15 dim 0 : vector<48x128xf32>, i32 -> vector<48x128xf32>
    %c126_i32_16 = arith.constant 126 : i32
    %42 = vector.broadcast %c126_i32_16 : i32 to vector<48x128xi32>
    %43 = arith.cmpi slt, %5, %42 : vector<48x128xi32>
    %44 = arith.select %43, %40, %41 : vector<48x128xi1>, vector<48x128xf32>
    %cst_17 = arith.constant -2.910000e-01 : f32
    %cst_18 = arith.constant -7.100000e-02 : f32
    %45 = vector.broadcast %cst_17 : f32 to vector<48x128xf32>
    %46 = vector.broadcast %cst_18 : f32 to vector<48x128xf32>
    %47 = arith.select %22, %45, %46 : vector<48x128xi1>, vector<48x128xf32>
    %cst_19 = arith.constant 2.570000e-01 : f32
    %48 = vector.broadcast %cst_19 : f32 to vector<48x128xf32>
    %49 = arith.select %17, %48, %47 : vector<48x128xi1>, vector<48x128xf32>
    %50 = arith.mulf %1, %49 : vector<48x128xf32>
    %cst_20 = arith.constant 4.390000e-01 : f32
    %cst_21 = arith.constant 0.000000e+00 : f32
    %51 = vector.broadcast %cst_20 : f32 to vector<48x128xf32>
    %52 = vector.broadcast %cst_21 : f32 to vector<48x128xf32>
    %53 = arith.select %22, %51, %52 : vector<48x128xi1>, vector<48x128xf32>
    %cst_22 = arith.constant 5.640000e-01 : f32
    %54 = vector.broadcast %cst_22 : f32 to vector<48x128xf32>
    %55 = arith.select %17, %54, %53 : vector<48x128xi1>, vector<48x128xf32>
    %56 = arith.mulf %39, %55 : vector<48x128xf32>
    %57 = arith.addf %50, %56 : vector<48x128xf32>
    %cst_23 = arith.constant 0.0979999974 : f32
    %cst_24 = arith.constant 0.000000e+00 : f32
    %58 = vector.broadcast %cst_23 : f32 to vector<48x128xf32>
    %59 = vector.broadcast %cst_24 : f32 to vector<48x128xf32>
    %60 = arith.select %17, %58, %59 : vector<48x128xi1>, vector<48x128xf32>
    %61 = arith.mulf %44, %60 : vector<48x128xf32>
    %62 = arith.addf %57, %61 : vector<48x128xf32>
    %cst_25 = arith.constant -3.680000e-01 : f32
    %cst_26 = arith.constant 0.000000e+00 : f32
    %63 = vector.broadcast %cst_25 : f32 to vector<48x128xf32>
    %64 = vector.broadcast %cst_26 : f32 to vector<48x128xf32>
    %65 = arith.select %24, %63, %64 : vector<48x128xi1>, vector<48x128xf32>
    %cst_27 = arith.constant -1.480000e-01 : f32
    %66 = vector.broadcast %cst_27 : f32 to vector<48x128xf32>
    %67 = arith.select %22, %66, %65 : vector<48x128xi1>, vector<48x128xf32>
    %68 = arith.mulf %34, %67 : vector<48x128xf32>
    %69 = arith.addf %62, %68 : vector<48x128xf32>
    %cst_28 = arith.constant 4.390000e-01 : f32
    %cst_29 = arith.constant 0.000000e+00 : f32
    %70 = vector.broadcast %cst_28 : f32 to vector<48x128xf32>
    %71 = vector.broadcast %cst_29 : f32 to vector<48x128xf32>
    %72 = arith.select %24, %70, %71 : vector<48x128xi1>, vector<48x128xf32>
    %73 = arith.mulf %29, %72 : vector<48x128xf32>
    %74 = arith.addf %69, %73 : vector<48x128xf32>
    %cst_30 = arith.constant 0.501960814 : f32
    %cst_31 = arith.constant 0.501960814 : f32
    %75 = vector.broadcast %cst_30 : f32 to vector<48x128xf32>
    %76 = vector.broadcast %cst_31 : f32 to vector<48x128xf32>
    %77 = arith.select %22, %75, %76 : vector<48x128xi1>, vector<48x128xf32>
    %cst_32 = arith.constant 6.274510e-02 : f32
    %78 = vector.broadcast %cst_32 : f32 to vector<48x128xf32>
    %79 = arith.select %17, %78, %77 : vector<48x128xi1>, vector<48x128xf32>
    %80 = arith.addf %74, %79 : vector<48x128xf32>
    %81 = tpu.iota {dimensions = array<i32: 0>} : vector<16x128xi32>
    %82 = tpu.iota {dimensions = array<i32: 1>} : vector<16x128xi32>
    %c47_i32_33 = arith.constant 47 : i32
    %83 = tpu.dynamic_rotate %80 by %c47_i32_33 dim 0 : vector<48x128xf32>, i32 -> vector<48x128xf32>
    %c46_i32 = arith.constant 46 : i32
    %84 = tpu.dynamic_rotate %80 by %c46_i32 dim 0 : vector<48x128xf32>, i32 -> vector<48x128xf32>
    %c47_i32_34 = arith.constant 47 : i32
    %85 = tpu.dynamic_rotate %3 by %c47_i32_34 dim 0 : vector<48x128xf32>, i32 -> vector<48x128xf32>
    %c46_i32_35 = arith.constant 46 : i32
    %86 = tpu.dynamic_rotate %3 by %c46_i32_35 dim 0 : vector<48x128xf32>, i32 -> vector<48x128xf32>
    %cst_36 = arith.constant 0.000000e+00 : f32
    %87 = vector.broadcast %cst_36 : f32 to vector<16x128xf32>
    %88 = arith.subf %83, %80 : vector<48x128xf32>
    %89 = arith.subf %85, %3 : vector<48x128xf32>
    %90 = arith.mulf %88, %88 : vector<48x128xf32>
    %91 = vector.extract_strided_slice %90 {offsets = [0, 0], sizes = [16, 128], strides = [1, 1]} : vector<48x128xf32> to vector<16x128xf32>
    %92 = vector.extract_strided_slice %90 {offsets = [16, 0], sizes = [16, 128], strides = [1, 1]} : vector<48x128xf32> to vector<16x128xf32>
    %93 = arith.addf %91, %92 : vector<16x128xf32>
    %94 = vector.extract_strided_slice %90 {offsets = [32, 0], sizes = [16, 128], strides = [1, 1]} : vector<48x128xf32> to vector<16x128xf32>
    %95 = arith.addf %93, %94 : vector<16x128xf32>
    %96 = math.absf %89 : vector<48x128xf32>
    %97 = vector.extract_strided_slice %96 {offsets = [0, 0], sizes = [16, 128], strides = [1, 1]} : vector<48x128xf32> to vector<16x128xf32>
    %98 = vector.extract_strided_slice %96 {offsets = [16, 0], sizes = [16, 128], strides = [1, 1]} : vector<48x128xf32> to vector<16x128xf32>
    %99 = arith.addf %97, %98 : vector<16x128xf32>
    %100 = vector.extract_strided_slice %96 {offsets = [32, 0], sizes = [16, 128], strides = [1, 1]} : vector<48x128xf32> to vector<16x128xf32>
    %101 = arith.addf %99, %100 : vector<16x128xf32>
    %cst_37 = arith.constant -5.000000e-03 : f32
    %102 = vector.broadcast %cst_37 : f32 to vector<16x128xf32>
    %103 = arith.mulf %95, %102 : vector<16x128xf32>
    %104 = math.exp %103 : vector<16x128xf32>
    %c128_i32_38 = arith.constant 128 : i32
    %105 = vector.broadcast %c128_i32_38 : i32 to vector<16x128xi32>
    %106 = arith.cmpi slt, %82, %105 : vector<16x128xi32>
    %c15_i32 = arith.constant 15 : i32
    %107 = vector.broadcast %c15_i32 : i32 to vector<16x128xi32>
    %108 = arith.cmpi slt, %81, %107 : vector<16x128xi32>
    %109 = arith.andi %108, %106 : vector<16x128xi1>
    %cst_39 = arith.constant 5.2083336E-4 : f32
    %cst_40 = arith.constant 0.000000e+00 : f32
    %110 = vector.broadcast %cst_39 : f32 to vector<16x128xf32>
    %111 = vector.broadcast %cst_40 : f32 to vector<16x128xf32>
    %112 = arith.select %109, %110, %111 : vector<16x128xi1>, vector<16x128xf32>
    %113 = arith.mulf %104, %101 : vector<16x128xf32>
    %114 = arith.mulf %112, %113 : vector<16x128xf32>
    %115 = arith.addf %87, %114 : vector<16x128xf32>
    %c127_i32_41 = arith.constant 127 : i32
    %116 = tpu.dynamic_rotate %80 by %c127_i32_41 dim 1 : vector<48x128xf32>, i32 -> vector<48x128xf32>
    %c127_i32_42 = arith.constant 127 : i32
    %117 = tpu.dynamic_rotate %3 by %c127_i32_42 dim 1 : vector<48x128xf32>, i32 -> vector<48x128xf32>
    %118 = arith.subf %116, %80 : vector<48x128xf32>
    %119 = arith.subf %117, %3 : vector<48x128xf32>
    %120 = arith.mulf %118, %118 : vector<48x128xf32>
    %121 = vector.extract_strided_slice %120 {offsets = [0, 0], sizes = [16, 128], strides = [1, 1]} : vector<48x128xf32> to vector<16x128xf32>
    %122 = vector.extract_strided_slice %120 {offsets = [16, 0], sizes = [16, 128], strides = [1, 1]} : vector<48x128xf32> to vector<16x128xf32>
    %123 = arith.addf %121, %122 : vector<16x128xf32>
    %124 = vector.extract_strided_slice %120 {offsets = [32, 0], sizes = [16, 128], strides = [1, 1]} : vector<48x128xf32> to vector<16x128xf32>
    %125 = arith.addf %123, %124 : vector<16x128xf32>
    %126 = math.absf %119 : vector<48x128xf32>
    %127 = vector.extract_strided_slice %126 {offsets = [0, 0], sizes = [16, 128], strides = [1, 1]} : vector<48x128xf32> to vector<16x128xf32>
    %128 = vector.extract_strided_slice %126 {offsets = [16, 0], sizes = [16, 128], strides = [1, 1]} : vector<48x128xf32> to vector<16x128xf32>
    %129 = arith.addf %127, %128 : vector<16x128xf32>
    %130 = vector.extract_strided_slice %126 {offsets = [32, 0], sizes = [16, 128], strides = [1, 1]} : vector<48x128xf32> to vector<16x128xf32>
    %131 = arith.addf %129, %130 : vector<16x128xf32>
    %cst_43 = arith.constant -5.000000e-03 : f32
    %132 = vector.broadcast %cst_43 : f32 to vector<16x128xf32>
    %133 = arith.mulf %125, %132 : vector<16x128xf32>
    %134 = math.exp %133 : vector<16x128xf32>
    %c127_i32_44 = arith.constant 127 : i32
    %135 = vector.broadcast %c127_i32_44 : i32 to vector<16x128xi32>
    %136 = arith.cmpi slt, %82, %135 : vector<16x128xi32>
    %c16_i32 = arith.constant 16 : i32
    %137 = vector.broadcast %c16_i32 : i32 to vector<16x128xi32>
    %138 = arith.cmpi slt, %81, %137 : vector<16x128xi32>
    %139 = arith.andi %138, %136 : vector<16x128xi1>
    %cst_45 = arith.constant 4.921260e-04 : f32
    %cst_46 = arith.constant 0.000000e+00 : f32
    %140 = vector.broadcast %cst_45 : f32 to vector<16x128xf32>
    %141 = vector.broadcast %cst_46 : f32 to vector<16x128xf32>
    %142 = arith.select %139, %140, %141 : vector<16x128xi1>, vector<16x128xf32>
    %143 = arith.mulf %134, %131 : vector<16x128xf32>
    %144 = arith.mulf %142, %143 : vector<16x128xf32>
    %145 = arith.addf %115, %144 : vector<16x128xf32>
    %c127_i32_47 = arith.constant 127 : i32
    %146 = tpu.dynamic_rotate %83 by %c127_i32_47 dim 1 : vector<48x128xf32>, i32 -> vector<48x128xf32>
    %c127_i32_48 = arith.constant 127 : i32
    %147 = tpu.dynamic_rotate %85 by %c127_i32_48 dim 1 : vector<48x128xf32>, i32 -> vector<48x128xf32>
    %148 = arith.subf %146, %80 : vector<48x128xf32>
    %149 = arith.subf %147, %3 : vector<48x128xf32>
    %150 = arith.mulf %148, %148 : vector<48x128xf32>
    %151 = vector.extract_strided_slice %150 {offsets = [0, 0], sizes = [16, 128], strides = [1, 1]} : vector<48x128xf32> to vector<16x128xf32>
    %152 = vector.extract_strided_slice %150 {offsets = [16, 0], sizes = [16, 128], strides = [1, 1]} : vector<48x128xf32> to vector<16x128xf32>
    %153 = arith.addf %151, %152 : vector<16x128xf32>
    %154 = vector.extract_strided_slice %150 {offsets = [32, 0], sizes = [16, 128], strides = [1, 1]} : vector<48x128xf32> to vector<16x128xf32>
    %155 = arith.addf %153, %154 : vector<16x128xf32>
    %156 = math.absf %149 : vector<48x128xf32>
    %157 = vector.extract_strided_slice %156 {offsets = [0, 0], sizes = [16, 128], strides = [1, 1]} : vector<48x128xf32> to vector<16x128xf32>
    %158 = vector.extract_strided_slice %156 {offsets = [16, 0], sizes = [16, 128], strides = [1, 1]} : vector<48x128xf32> to vector<16x128xf32>
    %159 = arith.addf %157, %158 : vector<16x128xf32>
    %160 = vector.extract_strided_slice %156 {offsets = [32, 0], sizes = [16, 128], strides = [1, 1]} : vector<48x128xf32> to vector<16x128xf32>
    %161 = arith.addf %159, %160 : vector<16x128xf32>
    %cst_49 = arith.constant -5.000000e-03 : f32
    %162 = vector.broadcast %cst_49 : f32 to vector<16x128xf32>
    %163 = arith.mulf %155, %162 : vector<16x128xf32>
    %164 = math.exp %163 : vector<16x128xf32>
    %c127_i32_50 = arith.constant 127 : i32
    %165 = vector.broadcast %c127_i32_50 : i32 to vector<16x128xi32>
    %166 = arith.cmpi slt, %82, %165 : vector<16x128xi32>
    %c15_i32_51 = arith.constant 15 : i32
    %167 = vector.broadcast %c15_i32_51 : i32 to vector<16x128xi32>
    %168 = arith.cmpi slt, %81, %167 : vector<16x128xi32>
    %169 = arith.andi %168, %166 : vector<16x128xi1>
    %cst_52 = arith.constant 5.24934381E-4 : f32
    %cst_53 = arith.constant 0.000000e+00 : f32
    %170 = vector.broadcast %cst_52 : f32 to vector<16x128xf32>
    %171 = vector.broadcast %cst_53 : f32 to vector<16x128xf32>
    %172 = arith.select %169, %170, %171 : vector<16x128xi1>, vector<16x128xf32>
    %173 = arith.mulf %164, %161 : vector<16x128xf32>
    %174 = arith.mulf %172, %173 : vector<16x128xf32>
    %175 = arith.addf %145, %174 : vector<16x128xf32>
    %c1_i32_54 = arith.constant 1 : i32
    %176 = tpu.dynamic_rotate %83 by %c1_i32_54 dim 1 : vector<48x128xf32>, i32 -> vector<48x128xf32>
    %c1_i32_55 = arith.constant 1 : i32
    %177 = tpu.dynamic_rotate %85 by %c1_i32_55 dim 1 : vector<48x128xf32>, i32 -> vector<48x128xf32>
    %178 = arith.subf %176, %80 : vector<48x128xf32>
    %179 = arith.subf %177, %3 : vector<48x128xf32>
    %180 = arith.mulf %178, %178 : vector<48x128xf32>
    %181 = vector.extract_strided_slice %180 {offsets = [0, 0], sizes = [16, 128], strides = [1, 1]} : vector<48x128xf32> to vector<16x128xf32>
    %182 = vector.extract_strided_slice %180 {offsets = [16, 0], sizes = [16, 128], strides = [1, 1]} : vector<48x128xf32> to vector<16x128xf32>
    %183 = arith.addf %181, %182 : vector<16x128xf32>
    %184 = vector.extract_strided_slice %180 {offsets = [32, 0], sizes = [16, 128], strides = [1, 1]} : vector<48x128xf32> to vector<16x128xf32>
    %185 = arith.addf %183, %184 : vector<16x128xf32>
    %186 = math.absf %179 : vector<48x128xf32>
    %187 = vector.extract_strided_slice %186 {offsets = [0, 0], sizes = [16, 128], strides = [1, 1]} : vector<48x128xf32> to vector<16x128xf32>
    %188 = vector.extract_strided_slice %186 {offsets = [16, 0], sizes = [16, 128], strides = [1, 1]} : vector<48x128xf32> to vector<16x128xf32>
    %189 = arith.addf %187, %188 : vector<16x128xf32>
    %190 = vector.extract_strided_slice %186 {offsets = [32, 0], sizes = [16, 128], strides = [1, 1]} : vector<48x128xf32> to vector<16x128xf32>
    %191 = arith.addf %189, %190 : vector<16x128xf32>
    %cst_56 = arith.constant -5.000000e-03 : f32
    %192 = vector.broadcast %cst_56 : f32 to vector<16x128xf32>
    %193 = arith.mulf %185, %192 : vector<16x128xf32>
    %194 = math.exp %193 : vector<16x128xf32>
    %c1_i32_57 = arith.constant 1 : i32
    %195 = vector.broadcast %c1_i32_57 : i32 to vector<16x128xi32>
    %196 = arith.cmpi sge, %82, %195 : vector<16x128xi32>
    %c15_i32_58 = arith.constant 15 : i32
    %197 = vector.broadcast %c15_i32_58 : i32 to vector<16x128xi32>
    %198 = arith.cmpi slt, %81, %197 : vector<16x128xi32>
    %199 = arith.andi %198, %196 : vector<16x128xi1>
    %cst_59 = arith.constant 5.24934381E-4 : f32
    %cst_60 = arith.constant 0.000000e+00 : f32
    %200 = vector.broadcast %cst_59 : f32 to vector<16x128xf32>
    %201 = vector.broadcast %cst_60 : f32 to vector<16x128xf32>
    %202 = arith.select %199, %200, %201 : vector<16x128xi1>, vector<16x128xf32>
    %203 = arith.mulf %194, %191 : vector<16x128xf32>
    %204 = arith.mulf %202, %203 : vector<16x128xf32>
    %205 = arith.addf %175, %204 : vector<16x128xf32>
    %206 = arith.subf %84, %80 : vector<48x128xf32>
    %207 = arith.subf %86, %3 : vector<48x128xf32>
    %208 = arith.mulf %206, %206 : vector<48x128xf32>
    %209 = vector.extract_strided_slice %208 {offsets = [0, 0], sizes = [16, 128], strides = [1, 1]} : vector<48x128xf32> to vector<16x128xf32>
    %210 = vector.extract_strided_slice %208 {offsets = [16, 0], sizes = [16, 128], strides = [1, 1]} : vector<48x128xf32> to vector<16x128xf32>
    %211 = arith.addf %209, %210 : vector<16x128xf32>
    %212 = vector.extract_strided_slice %208 {offsets = [32, 0], sizes = [16, 128], strides = [1, 1]} : vector<48x128xf32> to vector<16x128xf32>
    %213 = arith.addf %211, %212 : vector<16x128xf32>
    %214 = math.absf %207 : vector<48x128xf32>
    %215 = vector.extract_strided_slice %214 {offsets = [0, 0], sizes = [16, 128], strides = [1, 1]} : vector<48x128xf32> to vector<16x128xf32>
    %216 = vector.extract_strided_slice %214 {offsets = [16, 0], sizes = [16, 128], strides = [1, 1]} : vector<48x128xf32> to vector<16x128xf32>
    %217 = arith.addf %215, %216 : vector<16x128xf32>
    %218 = vector.extract_strided_slice %214 {offsets = [32, 0], sizes = [16, 128], strides = [1, 1]} : vector<48x128xf32> to vector<16x128xf32>
    %219 = arith.addf %217, %218 : vector<16x128xf32>
    %cst_61 = arith.constant -5.000000e-03 : f32
    %220 = vector.broadcast %cst_61 : f32 to vector<16x128xf32>
    %221 = arith.mulf %213, %220 : vector<16x128xf32>
    %222 = math.exp %221 : vector<16x128xf32>
    %c128_i32_62 = arith.constant 128 : i32
    %223 = vector.broadcast %c128_i32_62 : i32 to vector<16x128xi32>
    %224 = arith.cmpi slt, %82, %223 : vector<16x128xi32>
    %c14_i32 = arith.constant 14 : i32
    %225 = vector.broadcast %c14_i32 : i32 to vector<16x128xi32>
    %226 = arith.cmpi slt, %81, %225 : vector<16x128xi32>
    %227 = arith.andi %226, %224 : vector<16x128xi1>
    %cst_63 = arith.constant 5.58035739E-4 : f32
    %cst_64 = arith.constant 0.000000e+00 : f32
    %228 = vector.broadcast %cst_63 : f32 to vector<16x128xf32>
    %229 = vector.broadcast %cst_64 : f32 to vector<16x128xf32>
    %230 = arith.select %227, %228, %229 : vector<16x128xi1>, vector<16x128xf32>
    %231 = arith.mulf %222, %219 : vector<16x128xf32>
    %232 = arith.mulf %230, %231 : vector<16x128xf32>
    %233 = arith.addf %205, %232 : vector<16x128xf32>
    %c126_i32_65 = arith.constant 126 : i32
    %234 = tpu.dynamic_rotate %80 by %c126_i32_65 dim 1 : vector<48x128xf32>, i32 -> vector<48x128xf32>
    %c126_i32_66 = arith.constant 126 : i32
    %235 = tpu.dynamic_rotate %3 by %c126_i32_66 dim 1 : vector<48x128xf32>, i32 -> vector<48x128xf32>
    %236 = arith.subf %234, %80 : vector<48x128xf32>
    %237 = arith.subf %235, %3 : vector<48x128xf32>
    %238 = arith.mulf %236, %236 : vector<48x128xf32>
    %239 = vector.extract_strided_slice %238 {offsets = [0, 0], sizes = [16, 128], strides = [1, 1]} : vector<48x128xf32> to vector<16x128xf32>
    %240 = vector.extract_strided_slice %238 {offsets = [16, 0], sizes = [16, 128], strides = [1, 1]} : vector<48x128xf32> to vector<16x128xf32>
    %241 = arith.addf %239, %240 : vector<16x128xf32>
    %242 = vector.extract_strided_slice %238 {offsets = [32, 0], sizes = [16, 128], strides = [1, 1]} : vector<48x128xf32> to vector<16x128xf32>
    %243 = arith.addf %241, %242 : vector<16x128xf32>
    %244 = math.absf %237 : vector<48x128xf32>
    %245 = vector.extract_strided_slice %244 {offsets = [0, 0], sizes = [16, 128], strides = [1, 1]} : vector<48x128xf32> to vector<16x128xf32>
    %246 = vector.extract_strided_slice %244 {offsets = [16, 0], sizes = [16, 128], strides = [1, 1]} : vector<48x128xf32> to vector<16x128xf32>
    %247 = arith.addf %245, %246 : vector<16x128xf32>
    %248 = vector.extract_strided_slice %244 {offsets = [32, 0], sizes = [16, 128], strides = [1, 1]} : vector<48x128xf32> to vector<16x128xf32>
    %249 = arith.addf %247, %248 : vector<16x128xf32>
    %cst_67 = arith.constant -5.000000e-03 : f32
    %250 = vector.broadcast %cst_67 : f32 to vector<16x128xf32>
    %251 = arith.mulf %243, %250 : vector<16x128xf32>
    %252 = math.exp %251 : vector<16x128xf32>
    %c126_i32_68 = arith.constant 126 : i32
    %253 = vector.broadcast %c126_i32_68 : i32 to vector<16x128xi32>
    %254 = arith.cmpi slt, %82, %253 : vector<16x128xi32>
    %c16_i32_69 = arith.constant 16 : i32
    %255 = vector.broadcast %c16_i32_69 : i32 to vector<16x128xi32>
    %256 = arith.cmpi slt, %81, %255 : vector<16x128xi32>
    %257 = arith.andi %256, %254 : vector<16x128xi1>
    %cst_70 = arith.constant 4.96031775E-4 : f32
    %cst_71 = arith.constant 0.000000e+00 : f32
    %258 = vector.broadcast %cst_70 : f32 to vector<16x128xf32>
    %259 = vector.broadcast %cst_71 : f32 to vector<16x128xf32>
    %260 = arith.select %257, %258, %259 : vector<16x128xi1>, vector<16x128xf32>
    %261 = arith.mulf %252, %249 : vector<16x128xf32>
    %262 = arith.mulf %260, %261 : vector<16x128xf32>
    %263 = arith.addf %233, %262 : vector<16x128xf32>
    %c127_i32_72 = arith.constant 127 : i32
    %264 = tpu.dynamic_rotate %84 by %c127_i32_72 dim 1 : vector<48x128xf32>, i32 -> vector<48x128xf32>
    %c127_i32_73 = arith.constant 127 : i32
    %265 = tpu.dynamic_rotate %86 by %c127_i32_73 dim 1 : vector<48x128xf32>, i32 -> vector<48x128xf32>
    %266 = arith.subf %264, %80 : vector<48x128xf32>
    %267 = arith.subf %265, %3 : vector<48x128xf32>
    %268 = arith.mulf %266, %266 : vector<48x128xf32>
    %269 = vector.extract_strided_slice %268 {offsets = [0, 0], sizes = [16, 128], strides = [1, 1]} : vector<48x128xf32> to vector<16x128xf32>
    %270 = vector.extract_strided_slice %268 {offsets = [16, 0], sizes = [16, 128], strides = [1, 1]} : vector<48x128xf32> to vector<16x128xf32>
    %271 = arith.addf %269, %270 : vector<16x128xf32>
    %272 = vector.extract_strided_slice %268 {offsets = [32, 0], sizes = [16, 128], strides = [1, 1]} : vector<48x128xf32> to vector<16x128xf32>
    %273 = arith.addf %271, %272 : vector<16x128xf32>
    %274 = math.absf %267 : vector<48x128xf32>
    %275 = vector.extract_strided_slice %274 {offsets = [0, 0], sizes = [16, 128], strides = [1, 1]} : vector<48x128xf32> to vector<16x128xf32>
    %276 = vector.extract_strided_slice %274 {offsets = [16, 0], sizes = [16, 128], strides = [1, 1]} : vector<48x128xf32> to vector<16x128xf32>
    %277 = arith.addf %275, %276 : vector<16x128xf32>
    %278 = vector.extract_strided_slice %274 {offsets = [32, 0], sizes = [16, 128], strides = [1, 1]} : vector<48x128xf32> to vector<16x128xf32>
    %279 = arith.addf %277, %278 : vector<16x128xf32>
    %cst_74 = arith.constant -5.000000e-03 : f32
    %280 = vector.broadcast %cst_74 : f32 to vector<16x128xf32>
    %281 = arith.mulf %273, %280 : vector<16x128xf32>
    %282 = math.exp %281 : vector<16x128xf32>
    %c127_i32_75 = arith.constant 127 : i32
    %283 = vector.broadcast %c127_i32_75 : i32 to vector<16x128xi32>
    %284 = arith.cmpi slt, %82, %283 : vector<16x128xi32>
    %c14_i32_76 = arith.constant 14 : i32
    %285 = vector.broadcast %c14_i32_76 : i32 to vector<16x128xi32>
    %286 = arith.cmpi slt, %81, %285 : vector<16x128xi32>
    %287 = arith.andi %286, %284 : vector<16x128xi1>
    %cst_77 = arith.constant 5.62429719E-4 : f32
    %cst_78 = arith.constant 0.000000e+00 : f32
    %288 = vector.broadcast %cst_77 : f32 to vector<16x128xf32>
    %289 = vector.broadcast %cst_78 : f32 to vector<16x128xf32>
    %290 = arith.select %287, %288, %289 : vector<16x128xi1>, vector<16x128xf32>
    %291 = arith.mulf %282, %279 : vector<16x128xf32>
    %292 = arith.mulf %290, %291 : vector<16x128xf32>
    %293 = arith.addf %263, %292 : vector<16x128xf32>
    %c1_i32_79 = arith.constant 1 : i32
    %294 = tpu.dynamic_rotate %84 by %c1_i32_79 dim 1 : vector<48x128xf32>, i32 -> vector<48x128xf32>
    %c1_i32_80 = arith.constant 1 : i32
    %295 = tpu.dynamic_rotate %86 by %c1_i32_80 dim 1 : vector<48x128xf32>, i32 -> vector<48x128xf32>
    %296 = arith.subf %294, %80 : vector<48x128xf32>
    %297 = arith.subf %295, %3 : vector<48x128xf32>
    %298 = arith.mulf %296, %296 : vector<48x128xf32>
    %299 = vector.extract_strided_slice %298 {offsets = [0, 0], sizes = [16, 128], strides = [1, 1]} : vector<48x128xf32> to vector<16x128xf32>
    %300 = vector.extract_strided_slice %298 {offsets = [16, 0], sizes = [16, 128], strides = [1, 1]} : vector<48x128xf32> to vector<16x128xf32>
    %301 = arith.addf %299, %300 : vector<16x128xf32>
    %302 = vector.extract_strided_slice %298 {offsets = [32, 0], sizes = [16, 128], strides = [1, 1]} : vector<48x128xf32> to vector<16x128xf32>
    %303 = arith.addf %301, %302 : vector<16x128xf32>
    %304 = math.absf %297 : vector<48x128xf32>
    %305 = vector.extract_strided_slice %304 {offsets = [0, 0], sizes = [16, 128], strides = [1, 1]} : vector<48x128xf32> to vector<16x128xf32>
    %306 = vector.extract_strided_slice %304 {offsets = [16, 0], sizes = [16, 128], strides = [1, 1]} : vector<48x128xf32> to vector<16x128xf32>
    %307 = arith.addf %305, %306 : vector<16x128xf32>
    %308 = vector.extract_strided_slice %304 {offsets = [32, 0], sizes = [16, 128], strides = [1, 1]} : vector<48x128xf32> to vector<16x128xf32>
    %309 = arith.addf %307, %308 : vector<16x128xf32>
    %cst_81 = arith.constant -5.000000e-03 : f32
    %310 = vector.broadcast %cst_81 : f32 to vector<16x128xf32>
    %311 = arith.mulf %303, %310 : vector<16x128xf32>
    %312 = math.exp %311 : vector<16x128xf32>
    %c1_i32_82 = arith.constant 1 : i32
    %313 = vector.broadcast %c1_i32_82 : i32 to vector<16x128xi32>
    %314 = arith.cmpi sge, %82, %313 : vector<16x128xi32>
    %c14_i32_83 = arith.constant 14 : i32
    %315 = vector.broadcast %c14_i32_83 : i32 to vector<16x128xi32>
    %316 = arith.cmpi slt, %81, %315 : vector<16x128xi32>
    %317 = arith.andi %316, %314 : vector<16x128xi1>
    %cst_84 = arith.constant 5.62429719E-4 : f32
    %cst_85 = arith.constant 0.000000e+00 : f32
    %318 = vector.broadcast %cst_84 : f32 to vector<16x128xf32>
    %319 = vector.broadcast %cst_85 : f32 to vector<16x128xf32>
    %320 = arith.select %317, %318, %319 : vector<16x128xi1>, vector<16x128xf32>
    %321 = arith.mulf %312, %309 : vector<16x128xf32>
    %322 = arith.mulf %320, %321 : vector<16x128xf32>
    %323 = arith.addf %293, %322 : vector<16x128xf32>
    %c126_i32_86 = arith.constant 126 : i32
    %324 = tpu.dynamic_rotate %83 by %c126_i32_86 dim 1 : vector<48x128xf32>, i32 -> vector<48x128xf32>
    %c126_i32_87 = arith.constant 126 : i32
    %325 = tpu.dynamic_rotate %85 by %c126_i32_87 dim 1 : vector<48x128xf32>, i32 -> vector<48x128xf32>
    %326 = arith.subf %324, %80 : vector<48x128xf32>
    %327 = arith.subf %325, %3 : vector<48x128xf32>
    %328 = arith.mulf %326, %326 : vector<48x128xf32>
    %329 = vector.extract_strided_slice %328 {offsets = [0, 0], sizes = [16, 128], strides = [1, 1]} : vector<48x128xf32> to vector<16x128xf32>
    %330 = vector.extract_strided_slice %328 {offsets = [16, 0], sizes = [16, 128], strides = [1, 1]} : vector<48x128xf32> to vector<16x128xf32>
    %331 = arith.addf %329, %330 : vector<16x128xf32>
    %332 = vector.extract_strided_slice %328 {offsets = [32, 0], sizes = [16, 128], strides = [1, 1]} : vector<48x128xf32> to vector<16x128xf32>
    %333 = arith.addf %331, %332 : vector<16x128xf32>
    %334 = math.absf %327 : vector<48x128xf32>
    %335 = vector.extract_strided_slice %334 {offsets = [0, 0], sizes = [16, 128], strides = [1, 1]} : vector<48x128xf32> to vector<16x128xf32>
    %336 = vector.extract_strided_slice %334 {offsets = [16, 0], sizes = [16, 128], strides = [1, 1]} : vector<48x128xf32> to vector<16x128xf32>
    %337 = arith.addf %335, %336 : vector<16x128xf32>
    %338 = vector.extract_strided_slice %334 {offsets = [32, 0], sizes = [16, 128], strides = [1, 1]} : vector<48x128xf32> to vector<16x128xf32>
    %339 = arith.addf %337, %338 : vector<16x128xf32>
    %cst_88 = arith.constant -5.000000e-03 : f32
    %340 = vector.broadcast %cst_88 : f32 to vector<16x128xf32>
    %341 = arith.mulf %333, %340 : vector<16x128xf32>
    %342 = math.exp %341 : vector<16x128xf32>
    %c126_i32_89 = arith.constant 126 : i32
    %343 = vector.broadcast %c126_i32_89 : i32 to vector<16x128xi32>
    %344 = arith.cmpi slt, %82, %343 : vector<16x128xi32>
    %c15_i32_90 = arith.constant 15 : i32
    %345 = vector.broadcast %c15_i32_90 : i32 to vector<16x128xi32>
    %346 = arith.cmpi slt, %81, %345 : vector<16x128xi32>
    %347 = arith.andi %346, %344 : vector<16x128xi1>
    %cst_91 = arith.constant 5.29100536E-4 : f32
    %cst_92 = arith.constant 0.000000e+00 : f32
    %348 = vector.broadcast %cst_91 : f32 to vector<16x128xf32>
    %349 = vector.broadcast %cst_92 : f32 to vector<16x128xf32>
    %350 = arith.select %347, %348, %349 : vector<16x128xi1>, vector<16x128xf32>
    %351 = arith.mulf %342, %339 : vector<16x128xf32>
    %352 = arith.mulf %350, %351 : vector<16x128xf32>
    %353 = arith.addf %323, %352 : vector<16x128xf32>
    %c2_i32_93 = arith.constant 2 : i32
    %354 = tpu.dynamic_rotate %83 by %c2_i32_93 dim 1 : vector<48x128xf32>, i32 -> vector<48x128xf32>
    %c2_i32_94 = arith.constant 2 : i32
    %355 = tpu.dynamic_rotate %85 by %c2_i32_94 dim 1 : vector<48x128xf32>, i32 -> vector<48x128xf32>
    %356 = arith.subf %354, %80 : vector<48x128xf32>
    %357 = arith.subf %355, %3 : vector<48x128xf32>
    %358 = arith.mulf %356, %356 : vector<48x128xf32>
    %359 = vector.extract_strided_slice %358 {offsets = [0, 0], sizes = [16, 128], strides = [1, 1]} : vector<48x128xf32> to vector<16x128xf32>
    %360 = vector.extract_strided_slice %358 {offsets = [16, 0], sizes = [16, 128], strides = [1, 1]} : vector<48x128xf32> to vector<16x128xf32>
    %361 = arith.addf %359, %360 : vector<16x128xf32>
    %362 = vector.extract_strided_slice %358 {offsets = [32, 0], sizes = [16, 128], strides = [1, 1]} : vector<48x128xf32> to vector<16x128xf32>
    %363 = arith.addf %361, %362 : vector<16x128xf32>
    %364 = math.absf %357 : vector<48x128xf32>
    %365 = vector.extract_strided_slice %364 {offsets = [0, 0], sizes = [16, 128], strides = [1, 1]} : vector<48x128xf32> to vector<16x128xf32>
    %366 = vector.extract_strided_slice %364 {offsets = [16, 0], sizes = [16, 128], strides = [1, 1]} : vector<48x128xf32> to vector<16x128xf32>
    %367 = arith.addf %365, %366 : vector<16x128xf32>
    %368 = vector.extract_strided_slice %364 {offsets = [32, 0], sizes = [16, 128], strides = [1, 1]} : vector<48x128xf32> to vector<16x128xf32>
    %369 = arith.addf %367, %368 : vector<16x128xf32>
    %cst_95 = arith.constant -5.000000e-03 : f32
    %370 = vector.broadcast %cst_95 : f32 to vector<16x128xf32>
    %371 = arith.mulf %363, %370 : vector<16x128xf32>
    %372 = math.exp %371 : vector<16x128xf32>
    %c2_i32_96 = arith.constant 2 : i32
    %373 = vector.broadcast %c2_i32_96 : i32 to vector<16x128xi32>
    %374 = arith.cmpi sge, %82, %373 : vector<16x128xi32>
    %c15_i32_97 = arith.constant 15 : i32
    %375 = vector.broadcast %c15_i32_97 : i32 to vector<16x128xi32>
    %376 = arith.cmpi slt, %81, %375 : vector<16x128xi32>
    %377 = arith.andi %376, %374 : vector<16x128xi1>
    %cst_98 = arith.constant 5.29100536E-4 : f32
    %cst_99 = arith.constant 0.000000e+00 : f32
    %378 = vector.broadcast %cst_98 : f32 to vector<16x128xf32>
    %379 = vector.broadcast %cst_99 : f32 to vector<16x128xf32>
    %380 = arith.select %377, %378, %379 : vector<16x128xi1>, vector<16x128xf32>
    %381 = arith.mulf %372, %369 : vector<16x128xf32>
    %382 = arith.mulf %380, %381 : vector<16x128xf32>
    %383 = arith.addf %353, %382 : vector<16x128xf32>
    %c126_i32_100 = arith.constant 126 : i32
    %384 = tpu.dynamic_rotate %84 by %c126_i32_100 dim 1 : vector<48x128xf32>, i32 -> vector<48x128xf32>
    %c126_i32_101 = arith.constant 126 : i32
    %385 = tpu.dynamic_rotate %86 by %c126_i32_101 dim 1 : vector<48x128xf32>, i32 -> vector<48x128xf32>
    %386 = arith.subf %384, %80 : vector<48x128xf32>
    %387 = arith.subf %385, %3 : vector<48x128xf32>
    %388 = arith.mulf %386, %386 : vector<48x128xf32>
    %389 = vector.extract_strided_slice %388 {offsets = [0, 0], sizes = [16, 128], strides = [1, 1]} : vector<48x128xf32> to vector<16x128xf32>
    %390 = vector.extract_strided_slice %388 {offsets = [16, 0], sizes = [16, 128], strides = [1, 1]} : vector<48x128xf32> to vector<16x128xf32>
    %391 = arith.addf %389, %390 : vector<16x128xf32>
    %392 = vector.extract_strided_slice %388 {offsets = [32, 0], sizes = [16, 128], strides = [1, 1]} : vector<48x128xf32> to vector<16x128xf32>
    %393 = arith.addf %391, %392 : vector<16x128xf32>
    %394 = math.absf %387 : vector<48x128xf32>
    %395 = vector.extract_strided_slice %394 {offsets = [0, 0], sizes = [16, 128], strides = [1, 1]} : vector<48x128xf32> to vector<16x128xf32>
    %396 = vector.extract_strided_slice %394 {offsets = [16, 0], sizes = [16, 128], strides = [1, 1]} : vector<48x128xf32> to vector<16x128xf32>
    %397 = arith.addf %395, %396 : vector<16x128xf32>
    %398 = vector.extract_strided_slice %394 {offsets = [32, 0], sizes = [16, 128], strides = [1, 1]} : vector<48x128xf32> to vector<16x128xf32>
    %399 = arith.addf %397, %398 : vector<16x128xf32>
    %cst_102 = arith.constant -5.000000e-03 : f32
    %400 = vector.broadcast %cst_102 : f32 to vector<16x128xf32>
    %401 = arith.mulf %393, %400 : vector<16x128xf32>
    %402 = math.exp %401 : vector<16x128xf32>
    %c126_i32_103 = arith.constant 126 : i32
    %403 = vector.broadcast %c126_i32_103 : i32 to vector<16x128xi32>
    %404 = arith.cmpi slt, %82, %403 : vector<16x128xi32>
    %c14_i32_104 = arith.constant 14 : i32
    %405 = vector.broadcast %c14_i32_104 : i32 to vector<16x128xi32>
    %406 = arith.cmpi slt, %81, %405 : vector<16x128xi32>
    %407 = arith.andi %406, %404 : vector<16x128xi1>
    %cst_105 = arith.constant 5.66893432E-4 : f32
    %cst_106 = arith.constant 0.000000e+00 : f32
    %408 = vector.broadcast %cst_105 : f32 to vector<16x128xf32>
    %409 = vector.broadcast %cst_106 : f32 to vector<16x128xf32>
    %410 = arith.select %407, %408, %409 : vector<16x128xi1>, vector<16x128xf32>
    %411 = arith.mulf %402, %399 : vector<16x128xf32>
    %412 = arith.mulf %410, %411 : vector<16x128xf32>
    %413 = arith.addf %383, %412 : vector<16x128xf32>
    %c2_i32_107 = arith.constant 2 : i32
    %414 = tpu.dynamic_rotate %84 by %c2_i32_107 dim 1 : vector<48x128xf32>, i32 -> vector<48x128xf32>
    %c2_i32_108 = arith.constant 2 : i32
    %415 = tpu.dynamic_rotate %86 by %c2_i32_108 dim 1 : vector<48x128xf32>, i32 -> vector<48x128xf32>
    %416 = arith.subf %414, %80 : vector<48x128xf32>
    %417 = arith.subf %415, %3 : vector<48x128xf32>
    %418 = arith.mulf %416, %416 : vector<48x128xf32>
    %419 = vector.extract_strided_slice %418 {offsets = [0, 0], sizes = [16, 128], strides = [1, 1]} : vector<48x128xf32> to vector<16x128xf32>
    %420 = vector.extract_strided_slice %418 {offsets = [16, 0], sizes = [16, 128], strides = [1, 1]} : vector<48x128xf32> to vector<16x128xf32>
    %421 = arith.addf %419, %420 : vector<16x128xf32>
    %422 = vector.extract_strided_slice %418 {offsets = [32, 0], sizes = [16, 128], strides = [1, 1]} : vector<48x128xf32> to vector<16x128xf32>
    %423 = arith.addf %421, %422 : vector<16x128xf32>
    %424 = math.absf %417 : vector<48x128xf32>
    %425 = vector.extract_strided_slice %424 {offsets = [0, 0], sizes = [16, 128], strides = [1, 1]} : vector<48x128xf32> to vector<16x128xf32>
    %426 = vector.extract_strided_slice %424 {offsets = [16, 0], sizes = [16, 128], strides = [1, 1]} : vector<48x128xf32> to vector<16x128xf32>
    %427 = arith.addf %425, %426 : vector<16x128xf32>
    %428 = vector.extract_strided_slice %424 {offsets = [32, 0], sizes = [16, 128], strides = [1, 1]} : vector<48x128xf32> to vector<16x128xf32>
    %429 = arith.addf %427, %428 : vector<16x128xf32>
    %cst_109 = arith.constant -5.000000e-03 : f32
    %430 = vector.broadcast %cst_109 : f32 to vector<16x128xf32>
    %431 = arith.mulf %423, %430 : vector<16x128xf32>
    %432 = math.exp %431 : vector<16x128xf32>
    %c2_i32_110 = arith.constant 2 : i32
    %433 = vector.broadcast %c2_i32_110 : i32 to vector<16x128xi32>
    %434 = arith.cmpi sge, %82, %433 : vector<16x128xi32>
    %c14_i32_111 = arith.constant 14 : i32
    %435 = vector.broadcast %c14_i32_111 : i32 to vector<16x128xi32>
    %436 = arith.cmpi slt, %81, %435 : vector<16x128xi32>
    %437 = arith.andi %436, %434 : vector<16x128xi1>
    %cst_112 = arith.constant 5.66893432E-4 : f32
    %cst_113 = arith.constant 0.000000e+00 : f32
    %438 = vector.broadcast %cst_112 : f32 to vector<16x128xf32>
    %439 = vector.broadcast %cst_113 : f32 to vector<16x128xf32>
    %440 = arith.select %437, %438, %439 : vector<16x128xi1>, vector<16x128xf32>
    %441 = arith.mulf %432, %429 : vector<16x128xf32>
    %442 = arith.mulf %440, %441 : vector<16x128xf32>
    %443 = arith.addf %413, %442 : vector<16x128xf32>
    %444 = vector.shape_cast %443 : vector<16x128xf32> to vector<1x16x128xf32>
    %cst_114 = arith.constant dense<0.000000e+00> : vector<1xf32>
    %445 = vector.multi_reduction <add>, %444, %cst_114 [1, 2] : vector<1x16x128xf32> to vector<1xf32>
    %446 = vector.shape_cast %445 : vector<1xf32> to vector<1x1x1xf32>
    %447 = vector.extract %446[0, 0, 0] : f32 from vector<1x1x1xf32>
    %448 = vector.broadcast %447 : f32 to vector<1x8x128xf32>
    %c0_115 = arith.constant 0 : index
    %c0_116 = arith.constant 0 : index
    %c0_117 = arith.constant 0 : index
    %449 = vector.load %arg3[%c0_115, %c0_116, %c0_117] : memref<1x8x128xf32, #tpu.memory_space<vmem>>, vector<1x8x128xf32>
    tpu.vector_store %arg3[%c0_115, %c0_116, %c0_117], %448 {strides = array<i32>} : memref<1x8x128xf32, #tpu.memory_space<vmem>>, vector<1x8x128xf32>,
    return
  }
  func.func @transform_0(%arg0: i32) -> (i32, i32, i32) {
    %c0_i32 = arith.constant 0 : i32
    %c0_i32_0 = arith.constant 0 : i32
    %c0_i32_1 = arith.constant 0 : i32
    return %arg0, %c0_i32, %c0_i32_0 : i32, i32, i32
  }
  func.func @transform_1(%arg0: i32) -> (i32, i32, i32) {
    %c0_i32 = arith.constant 0 : i32
    %c0_i32_0 = arith.constant 0 : i32
    %c0_i32_1 = arith.constant 0 : i32
    return %arg0, %c0_i32, %c0_i32_0 : i32, i32, i32
  }
  func.func @transform_2(%arg0: i32) -> (i32, i32, i32) {
    %c0_i32 = arith.constant 0 : i32
    %c0_i32_0 = arith.constant 0 : i32
    %c0_i32_1 = arith.constant 0 : i32
    return %arg0, %c0_i32, %c0_i32_0 : i32, i32, i32
  }
}

</mosaic_0001>

<bundles_post_ra>
// kernel: smooth_loss.1
= control target key start
LH: loop header
LB: loop body
LE: loop exit
PB: predicated region body
PF: predicated region fallthrough
CT: control target
= control target key end

     0   :  { %7 = vsyncpa [#allocation3], 0  ;;  %s3334_s0 = inlined_call_operand.hbm [shape: f32[2,48,128], index: 0, kind: input, shape index: {}]   ;;  %s3335_s1 = inlined_call_operand.hbm [shape: f32[2,48,128], index: 1, kind: input, shape index: {}]   ;;  %s3336_s2 = inlined_call_operand.vmem [shape: f32[2,8,128], index: 2, kind: output, shape index: {}]  }
   0x1   :  { %9 = vsyncpa [#allocation3 + $0x1], 0 }
   0x2   :  { %10 = vsyncpa [#allocation5], 0 }
   0x3   :  { %12 = vsyncpa [#allocation5 + $0x1], 0  ;;  %s1754_s9 = smov 0   ;;  %s1756_s10 = smov 0  }
   0x4   :  { %s1758_s11 = smov 0   ;;  %s1760_s12 = smov 0  }
   0x5 LB: > { %s1773_s13 = sadd.s32 4294967295, %s1726_s12   ;;  %s1776_s14 = sadd.s32 1, %s1726_s12   ;;  %s1726_s12 = sphi %s1760_s12, %s3486_s12   ;;  %s1722_s11 = sphi %s1758_s11, %s3485_s11   ;;  %s1718_s10 = sphi %s1756_s10, %s3484_s10   ;;  %s1714_s9 = sphi %s1754_s9, %s3483_s9  }
   0x6   : > { %s22_s15 = ssub.s32 %s1726_s12, %s1776_s14  ;;  %s25_s16 = sadd.s32 1, %s1722_s11 }
   0x7   : > { %p23_p0 = scmp.eq.s32.totalorder %s22_s15, 0  ;;  %p32_p1 = scmp.ne.s32.totalorder %s1722_s11, %s1718_s10 }
   0x8   : > { %p33_p2 = scmp.eq.s32.totalorder %s1726_s12, 0  ;;  %p38_p3 = scmp.ne.s32.totalorder %s1718_s10, %s1714_s9 }
   0x9   : > { %s1786_s17 = scalar_select %p23_p0, %s1722_s11, %s25_s16  }
   0xa   : > { %p34_p4 = por %p33_p2, %p32_p1  ;;  %p39_p5 = scmp.eq.s32.totalorder %s1773_s13, 0 }
   0xb   : > { %p1534_p6 = scmp.lt.s32.totalorder %s1726_s12, 2  ;;  %s1795_s19 = sand.u32 1, %s1722_s11  }
   0xc   : > { %p1790_p7 = por %p39_p5, %p38_p3  ;;  %s1516_s20 = smul.u32 48, %s1795_s19 }
   0xd   : > { %s1517_s21 = smul.u32 768, %s1726_s12  ;;  %p1799_p8 = pnand %p1534_p6, %p34_p4 }
   0xe   : > { %s3369_s18 = scalar_select %p1790_p7, 1, 0 }
   0xf   : > { %s1808_s25 = scalar_lea.hbm %s3334_s0, %s1517_s21  ;;  %s118_s26 = scalar_lea.vmem [#allocation2], %s1516_s20 }
  0x10   : > { %s125_s27 = sshll.u32 %s118_s26, 4  ;;  %s115_s28 = scalar_lea.sflag [#allocation3], %s1795_s19  ;;  %s1812_s27 = int_to_ptr.vmem [resolvable:$true] %s125_s27 }
  0x11   : > { %s1632_s29 = scalar_lea.hbm %s1808_s25, 768  ;;  %p1634_p11 = pneg %p1799_p8 }
  0x12   : > { %p1633_p10 = scmp.ne.s32.totalorder %s1808_s25, %s1632_s29  ;;  %s1637_s4 = scalar_lea.hbm %s3334_s0, 1536 }
  0x13   : > { %p1638_p0 = scmp.lt.s32.totalorder %s1808_s25, %s3334_s0  ;;  %p1639_p1 = scmp.lt.s32.totalorder %s1637_s4, %s1632_s29 }
  0x14   : > { %p1635_p12 = pnand %p1634_p11, %p1633_p10 }
  0x15   : > { %p1640_p2 = por %p1639_p1, %p1638_p0 }
  0x16   : > { %p1636_p13 = pneg %p1635_p12 }
  0x18   : > { %p1641_p3 = pnand %p1640_p2, %p1636_p13 }
  0x1a   : > { %1644 = shalt.err (!%p1641_p3)
}
  0x1b   : > { %s1645_s7 = scalar_lea.vmem %s1812_s27, 768  ;;  %s1728_s8 = smov [#allocation2]  }
  0x1c   : > { %p1646_p4 = scmp.ne.s32.totalorder %s1812_s27, %s1645_s7  ;;  %s1650_s9 = sshll.u32 %s1728_s8, 4  ;;  %s1651_s9 = int_to_ptr.vmem [resolvable:$false] %s1650_s9 }
  0x1d   : > { %s1652_s15 = scalar_lea.vmem %s1651_s9, 1536  ;;  %p1653_p10 = scmp.lt.s32.totalorder %s1812_s27, %s1651_s9 }
  0x1e   : > { %p1648_p5 = pnand %p1646_p4, %p1634_p11  ;;  %p1654_p12 = scmp.lt.s32.totalorder %s1652_s15, %s1645_s7 }
  0x20   : > { %p1649_p6 = pneg %p1648_p5  ;;  %p1655_p9 = por %p1654_p12, %p1653_p10 }
  0x22   : > { %p1656_p0 = pnand %p1655_p9, %p1649_p6 }
  0x24   : > { %1659 = shalt.err (!%p1656_p0)
}
  0x25   : > { %s1729_s16 = smov 128   ;;  %s1730_s23 = smov 8  }
  0x26   : > { %1530 = dma.hbm_to_vmem [thread:$0]  (!%p1799_p8), %s1808_s25, 768, %s1812_s27, %s115_s28, %s1729_s16, %s1729_s16, %s1730_s23  }
  0x27   : > { %p154_p9 = scmp.lt.s32.totalorder %s1726_s12, 3  ;;  %s1851_s29 = scalar_lea.hbm %s3335_s1, %s1517_s21 }
  0x28   : > { %p3371_p13 = scmp.ge.s32.totalorder %s1726_s12, 1  ;;  %s139_s3 = scalar_lea.vmem [#allocation4], %s1516_s20 }
  0x29   : > { %s146_s4 = sshll.u32 %s139_s3, 4  ;;  %s136_s25 = scalar_lea.sflag [#allocation5], %s1795_s19  ;;  %s1861_s4 = int_to_ptr.vmem [resolvable:$true] %s146_s4 }
  0x2a   : > { %p1855_p1 = pnand %p3371_p13, %p154_p9  ;;  %s1660_s27 = scalar_lea.hbm %s1851_s29, 768 }
  0x2b   : > { %p1661_p2 = scmp.ne.s32.totalorder %s1851_s29, %s1660_s27  ;;  %s1665_s28 = scalar_lea.hbm %s3335_s1, 1536 }
  0x2c   : > { %p1666_p5 = scmp.lt.s32.totalorder %s1851_s29, %s3335_s1  ;;  %p1667_p6 = scmp.lt.s32.totalorder %s1665_s28, %s1660_s27 }
  0x2d   : > { %p1663_p3 = pnand %p1661_p2, %p1634_p11 }
  0x2e   : > { %p1668_p10 = por %p1667_p6, %p1666_p5 }
  0x2f   : > { %p1664_p4 = pneg %p1663_p3 }
  0x31   : > { %p1669_p12 = pnand %p1668_p10, %p1664_p4 }
  0x33   : > { %1672 = shalt.err (!%p1669_p12)
}
  0x34   : > { %s1673_s19 = scalar_lea.vmem %s1861_s4, 768  ;;  %s1731_s20 = smov [#allocation4]  }
  0x35   : > { %p1674_p0 = scmp.ne.s32.totalorder %s1861_s4, %s1673_s19  ;;  %s1678_s7 = sshll.u32 %s1731_s20, 4  ;;  %s1679_s7 = int_to_ptr.vmem [resolvable:$false] %s1678_s7 }
  0x36   : > { %s1680_s8 = scalar_lea.vmem %s1679_s7, 1536  ;;  %p1681_p2 = scmp.lt.s32.totalorder %s1861_s4, %s1679_s7 }
  0x37   : > { %p1676_p9 = pnand %p1674_p0, %p1634_p11  ;;  %p1682_p3 = scmp.lt.s32.totalorder %s1680_s8, %s1673_s19 }
  0x39   : > { %p1677_p13 = pneg %p1676_p9  ;;  %p1683_p7 = por %p1682_p3, %p1681_p2 }
  0x3b   : > { %p1684_p5 = pnand %p1683_p7, %p1677_p13 }
  0x3d   : > { %1687 = shalt.err (!%p1684_p5)
}
  0x3e   : > { %1533 = dma.hbm_to_vmem [thread:$0]  (!%p1799_p8), %s1851_s29, 768, %s1861_s4, %s136_s25, %s1729_s16, %s1729_s16, %s1730_s23  }
  0x3f   : > { %158 = sbr.rel (%p1855_p1) target bundleno = 808 (0x328), region = 28 }
  0x44   : > { %s160_s9 = sand.u32 1, %s1718_s10   ;;  %p3373_p11 = scmp.ne.s32.totalorder %s3369_s18, 0 }
  0x45   : > { %s1520_s15 = smul.u32 48, %s160_s9  ;;  %s161_s24 = scalar_lea.sflag [#allocation3], %s160_s9 }
  0x47   : > { %s164_s26 = scalar_lea.vmem [#allocation2], %s1520_s15 }
  0x48   : > { %1705 = dma.done.wait (%p3373_p11), %s161_s24, 768  }
  0x49   : > { %1707 = vsyncadd (%p3373_p11), %s161_s24, 4294966528  ;;  %s170_s22 = scalar_lea.sflag [#allocation5], %s160_s9  ;;  %s1896_s3 = scalar_lea.vmem [#allocation4], %s1520_s15 }
  0x4a   : > { %1709 = dma.done.wait (%p3373_p11), %s170_s22, 768  }
  0x4b   : > { %1711 = vsyncadd (%p3373_p11), %s170_s22, 4294966528  ;;  %v1902_v0 = vld [vmem:[%s164_s26 + $0x10] sm:$0xff]  ;;  %v1904_v1 = vld [vmem:[%s164_s26] sm:$0xff]  ;;  %s1732_s16 = smov 127   ;;  %s1733_s18 = smov 126   ;;  %v214_v8 = vlaneseq }
  0x4c   : > { %362 = vrot.lane.b32.xlu1 %v1902_v0, %s1732_s16  ;;  %358 = vrot.lane.b32.xlu0 %v1904_v1, %s1732_s16  ;;  %v1910_v2 = vld [vmem:[%s164_s26 + $0x18] sm:$0xff]  ;;  %v1912_v3 = vld [vmem:[%s164_s26 + $0x8] sm:$0xff]  ;;  %s1734_s23 = smov 1   ;;  %s1735_s29 = smov 2   ;;  %v1736_v61 = vmov -0.071  }
  0x4d   : > { %v1918_v4 = vld [vmem:[%s164_s26 + $0x28] sm:$0xff]  ;;  %v1920_v5 = vld [vmem:[%s164_s26 + $0x20] sm:$0xff]  ;;  %v1972_v9 = vshrl.u32 %v214_v8, 7  ;;  %v1978_v13 = vand.u32 127, %v214_v8  ;;  %p198_p7 = scmp.lt.s32.totalorder %s1773_s13, 1 }
  0x4e   : > { %v1963_v6 = vld [vmem:[%s1896_s3 + $0x8] sm:$0xff]  ;;  %v1966_v7 = vld [vmem:[%s1896_s3] sm:$0xff] }
  0x4f   : > { %3374 = vst [vmem:[#allocation8_spill] sm:$0xff] %v1963_v6  ;;  %3375 = vst [vmem:[#allocation9_spill] sm:$0xff] %v1966_v7  ;;  %v218_v10 = vadd.s32 24, %v1972_v9  ;;  %v1976_v11 = vadd.s32 8, %v1972_v9  ;;  %v220_v15 = vadd.s32 40, %v1972_v9  ;;  %v219_v17 = vadd.s32 32, %v1972_v9 }
  0x50   : > { %364 = vrot.lane.b32.xlu1 %v1910_v2, %s1732_s16  ;;  %360 = vrot.lane.b32.xlu0 %v1912_v3, %s1732_s16  ;;  %3377 = vst [vmem:[#allocation11_spill] sm:$0xff] %v1978_v13  ;;  %v223_v24 = vmul.u32 128, %v1972_v9  ;;  %v217_v25 = vadd.s32 16, %v1972_v9  ;;  %s3488_s13 = smov (!%p198_p7, %s1773_s13), 1 }
  0x51   : > { %3376 = vst [vmem:[#allocation10_spill] sm:$0xff] %v1976_v11  ;;  %v226_v12 = vmul.u32 128, %v218_v10  ;;  %v224_v14 = vmul.u32 128, %v1976_v11  ;;  %v3349_v10 = vmov 0.0   ;;  %s1513_s30 = sshll.u32 %s3488_s13, 3 }
  0x52   : > { %v228_v19 = vmul.u32 128, %v220_v15  ;;  %v227_v21 = vmul.u32 128, %v219_v17  ;;  %v229_v30 = vadd.s32 %v223_v24, %v1978_v13  ;;  %s201_s27 = scalar_lea.vmem %s3336_s2, %s1513_s30 }
  0x53   : > { %v232_v16 = vadd.s32 %v226_v12, %v1978_v13  ;;  %v230_v18 = vadd.s32 %v224_v14, %v1978_v13  ;;  %v225_v31 = vmul.u32 128, %v217_v25  ;;  %v3340_v14 = vmov 0.5019608  }
  0x54   : > { %368 = vrot.lane.b32.xlu1 %v1918_v4, %s1732_s16  ;;  %366 = vrot.lane.b32.xlu0 %v1920_v5, %s1732_s16  ;;  %v234_v23 = vadd.s32 %v228_v19, %v1978_v13  ;;  %v233_v27 = vadd.s32 %v227_v21, %v1978_v13  ;;  %v235_v36 = vcvt.s32.f32 %v229_v30  ;;  %v3388_v25 = vmov 0 }
  0x55   : > { %v238_v20 = vcvt.s32.f32 %v232_v16  ;;  %v236_v22 = vcvt.s32.f32 %v230_v18  ;;  %v231_v37 = vadd.s32 %v225_v31, %v1978_v13 }
  0x56   : > { %v240_v29 = vcvt.s32.f32 %v234_v23  ;;  %v239_v33 = vcvt.s32.f32 %v233_v27  ;;  %v241_v42 = vmul.f32 0.33333334, %v235_v36 }
  0x57   : > { %v244_v26 = vmul.f32 0.33333334, %v238_v20  ;;  %v242_v28 = vmul.f32 0.33333334, %v236_v22  ;;  %v237_v43 = vcvt.s32.f32 %v231_v37 }
  0x58   : > { %392 = vrot.lane.b32.xlu1 %v1912_v3, %s1733_s18  ;;  %390 = vrot.lane.b32.xlu0 %v1904_v1, %s1733_s18  ;;  %v246_v35 = vmul.f32 0.33333334, %v240_v29  ;;  %v245_v39 = vmul.f32 0.33333334, %v239_v33  ;;  %v247_v48 = vfloor.f32 %v241_v42 }
  0x59   : > { %v250_v32 = vfloor.f32 %v244_v26  ;;  %v248_v34 = vfloor.f32 %v242_v28  ;;  %v243_v49 = vmul.f32 0.33333334, %v237_v43 }
  0x5a   : > { %v252_v41 = vfloor.f32 %v246_v35  ;;  %v251_v45 = vfloor.f32 %v245_v39  ;;  %v253_v52 = vmul.f32 3.0, %v247_v48 }
  0x5b   : > { %v256_v38 = vmul.f32 3.0, %v250_v32  ;;  %v254_v40 = vmul.f32 3.0, %v248_v34  ;;  %v249_v53 = vfloor.f32 %v243_v49  ;;  %v3396_v49 = vmov 0 }
  0x5c   : > { %396 = vrot.lane.b32.xlu1 %v1910_v2, %s1733_s18  ;;  %394 = vrot.lane.b32.xlu0 %v1902_v0, %s1733_s18  ;;  %v258_v47 = vmul.f32 3.0, %v252_v41  ;;  %v257_v50 = vmul.f32 3.0, %v251_v45  ;;  %v2018_v59 = vsub.f32 %v235_v36, %v253_v52 }
  0x5d   : > { %v1991_v44 = vsub.f32 %v238_v20, %v256_v38  ;;  %v1993_v46 = vsub.f32 %v236_v22, %v254_v40  ;;  %v255_v60 = vmul.f32 3.0, %v249_v53 }
  0x5e   : > { %v1999_v51 = vsub.f32 %v240_v29, %v258_v47  ;;  %v2013_v58 = vsub.f32 %v239_v33, %v257_v50  ;;  %vm271_vm14 = vcmp.ge.f32.partialorder %v2018_v59, 0.5  ;;  %vm277_vm15 = vcmp.lt.f32.partialorder %v2018_v59, 1.5 }
  0x5f   : > { %vm274_vm0 = vcmp.ge.f32.partialorder %v1991_v44, 0.5  ;;  %vm280_vm1 = vcmp.lt.f32.partialorder %v1991_v44, 1.5  ;;  %vm272_vm2 = vcmp.ge.f32.partialorder %v1993_v46, 0.5  ;;  %vm278_vm3 = vcmp.lt.f32.partialorder %v1993_v46, 1.5 }
  0x60   : > { %400 = vrot.lane.b32.xlu1 %v1918_v4, %s1733_s18  ;;  %398 = vrot.lane.b32.xlu0 %v1920_v5, %s1733_s18  ;;  %vm2001_vm4 = vmand %vm274_vm0, %vm280_vm1  ;;  %3382 = vst [vmem:[#allocation12_spill] sm:$0xff] %v2013_v58  ;;  %vm3339_vm6 = vcmp.ge.f32.partialorder %v1993_v46, 1.5  ;;  %vm276_vm7 = vcmp.ge.f32.partialorder %v1999_v51, 0.5  ;;  %vm282_vm8 = vcmp.lt.f32.partialorder %v1999_v51, 1.5  ;;  %vm268_vm9 = vcmp.lt.f32.partialorder %v1991_v44, 0.5 }
  0x61   : > { %vm2009_vm5 = vmand %vm272_vm2, %vm278_vm3  ;;  %v424_v62 = vsel %vm2001_vm4, -0.291, %v1736_v61  ;;  %vm266_vm10 = vcmp.lt.f32.partialorder %v1993_v46, 0.5  ;;  %v2033_v12 = vsel %vm3339_vm6, -0.368, %v3349_v10  ;;  %vm275_vm12 = vcmp.ge.f32.partialorder %v2013_v58, 0.5 }
  0x62   : > { %v422_v63 = vsel %vm2009_vm5, -0.291, %v1736_v61  ;;  %v2038_v15 = vsel %vm266_vm10, 0.0627451, %v3340_v14  ;;  %vm2044_vm11 = vmand %vm276_vm7, %vm282_vm8  ;;  %vm281_vm13 = vcmp.lt.f32.partialorder %v2013_v58, 1.5  ;;  %vm3338_vm0 = vcmp.ge.f32.partialorder %v1999_v51, 1.5 }
  0x63   : > { %3383 = vst [vmem:[#allocation13_spill] sm:$0xff] %v2038_v15  ;;  %v440_v18 = vsel %vm2009_vm5, 0.439, %v3349_v10  ;;  %v2056_v19 = vsel %vm268_vm9, 0.0627451, %v3340_v14  ;;  %v2065_v22 = vsub.f32 %v237_v43, %v255_v60  ;;  %vm270_vm1 = vcmp.lt.f32.partialorder %v1999_v51, 0.5  ;;  %vm2074_vm2 = vmand %vm275_vm12, %vm281_vm13 }
  0x64   : > { %329 = vrot.lane.b32.xlu1 %v1912_v3, %s1734_s23  ;;  %327 = vrot.lane.b32.xlu0 %v1904_v1, %s1734_s23  ;;  %3386 = vst [vmem:[#allocation14_spill] sm:$0xff] %v2056_v19  ;;  %v430_v20 = vsel %vm268_vm9, 0.257, %v424_v62  ;;  %v428_v21 = vsel %vm266_vm10, 0.257, %v422_v63  ;;  %v3389_v25 = vsel %vm2074_vm2, 4294967295, %v3388_v25  ;;  %vm2099_vm7 = vmand %vm271_vm14, %vm277_vm15 }
  0x65   : > { %3387 = vst [vmem:[#allocation15_spill] sm:$0xff] %v2065_v22  ;;  %v426_v23 = vsel %vm2044_vm11, -0.291, %v1736_v61  ;;  %v444_v24 = vsel %vm2044_vm11, 0.439, %v3349_v10  ;;  %3390 = vst [vmem:[#allocation16_spill] sm:$0xff] %v3389_v25  ;;  %v2146_v45 = vmul.f32 %v430_v20, %v1910_v2 }
  0x66   : > { %vm376_vm3 = vcmp.lt.s32.totalorder %v1972_v9, 7  ;;  %v2081_v26 = vsel %vm266_vm10, 0.564, %v440_v18  ;;  %v2089_v28 = vsel %vm270_vm1, 0.0627451, %v3340_v14  ;;  %vm3354_vm8 = vcmp.lt.f32.partialorder %v2013_v58, 0.5 }
  0x67   : > { %3391 = vst [vmem:[#allocation17_spill] sm:$0xff] %v2089_v28  ;;  %v2106_v32 = vsel %vm3338_vm0, -0.368, %v3349_v10  ;;  %v442_v33 = vsel %vm2001_vm4, 0.439, %v3349_v10  ;;  %vm265_vm12 = vcmp.lt.f32.partialorder %v2018_v59, 0.5 }
  0x68   : > { %333 = vrot.lane.b32.xlu1 %v1910_v2, %s1734_s23  ;;  %331 = vrot.lane.b32.xlu0 %v1902_v0, %s1734_s23  ;;  %3394 = vst [vmem:[#allocation18_spill] sm:$0xff] %v2106_v32  ;;  %v432_v34 = vsel %vm270_vm1, 0.257, %v426_v23  ;;  %v2117_v35 = vsel %vm270_vm1, 0.564, %v444_v24  ;;  %vm273_vm13 = vcmp.ge.f32.partialorder %v2065_v22, 0.5 }
  0x69   : > { %vm279_vm14 = vcmp.lt.f32.partialorder %v2065_v22, 1.5  ;;  %v425_v36 = vsel %vm2074_vm2, -0.291, %v1736_v61  ;;  %v443_v37 = vsel %vm2074_vm2, 0.439, %v3349_v10  ;;  %vm3356_vm0 = vcmp.lt.f32.partialorder %v2065_v22, 0.5 }
  0x6a   : > { %v421_v38 = vsel %vm2099_vm7, -0.291, %v1736_v61  ;;  %v2136_v40 = vsel %vm268_vm9, 0.564, %v442_v33  ;;  %v439_v42 = vsel %vm2099_vm7, 0.439, %v3349_v10  ;;  %vm2161_vm6 = vmand %vm273_vm13, %vm279_vm14 }
  0x6b   : > { %v2151_v47 = vsel %vm265_vm12, 0.098, %v3349_v10  ;;  %v2156_v48 = vsel %vm265_vm12, 0.0627451, %v3340_v14  ;;  %v3397_v49 = vsel %vm2161_vm6, 4294967295, %v3396_v49  ;;  %vm291_vm13 = vcmp.ge.f32.partialorder %v2065_v22, 1.5 }
  0x6c   : > { %337 = vrot.lane.b32.xlu1 %v1918_v4, %s1734_s23  ;;  %335 = vrot.lane.b32.xlu0 %v1920_v5, %s1734_s23  ;;  %3395 = vst [vmem:[#allocation19_spill] sm:$0xff] %v2156_v48  ;;  %3398 = vst [vmem:[#allocation20_spill] sm:$0xff] %v3397_v49  ;;  %v431_v50 = vsel %vm3354_vm8, 0.257, %v425_v36  ;;  %v2172_v52 = vsel %vm3354_vm8, 0.564, %v443_v37 }
  0x6d   : > { %v427_v53 = vsel %vm265_vm12, 0.257, %v421_v38  ;;  %v2179_v62 = vsel %vm265_vm12, 0.564, %v439_v42  ;;  %vm292_vm14 = vcmp.ge.f32.partialorder %v1991_v44, 1.5  ;;  %vm289_vm12 = vcmp.ge.f32.partialorder %v2018_v59, 1.5 }
  0x6e   : > { %v423_v18 = vsel %vm2161_vm6, -0.291, %v1736_v61  ;;  %v441_v20 = vsel %vm2161_vm6, 0.439, %v3349_v10  ;;  %v2206_v33 = vsel %vm3356_vm0, 0.098, %v3349_v10  ;;  %v2234_v39 = vmul.f32 %v431_v50, %v1920_v5 }
  0x6f   : > { %v2218_v36 = vsel %vm292_vm14, -0.368, %v3349_v10  ;;  %vm414_vm15 = vcmp.lt.s32.totalorder %v1978_v13, 126  ;;  %v429_v38 = vsel %vm3356_vm0, 0.257, %v423_v18  ;;  %v3403_v15 = vmov 0.0  }
  0x70   : > { %297 = vrot.lane.b32.xlu1 %v1912_v3, %s1735_s29  ;;  %295 = vrot.lane.b32.xlu0 %v1904_v1, %s1735_s29  ;;  %v447_v42 = vsel %vm3356_vm0, 0.564, %v441_v20  ;;  %v2231_v14 = vsel %vm270_vm1, 0.098, %v3349_v10  ;;  %3400 = vst [vmem:[#allocation22_spill] sm:$0xff] %v2234_v39  ;;  %vm313_vm1 = vcmp.lt.s32.totalorder %v1972_v9, 1 }
  0x71   : > { %v2241_v11 = vsel %vm268_vm9, 0.098, %v3349_v10  ;;  %v2246_v18 = vsel %vm3354_vm8, 0.098, %v3349_v10  ;;  %vm3402_vm9 = vcmp.lt.s32.totalorder %v1978_v13, 127  ;;  %vm351_vm8 = vcmp.ge.s32.totalorder %v1978_v13, 1 }
  0x74   : > { %301 = vrot.lane.b32.xlu1 %v1910_v2, %s1735_s29  ;;  %299 = vrot.lane.b32.xlu0 %v1902_v0, %s1735_s29  ;;  %v2166_v2 = vmul.f32 %v428_v21, %v1912_v3  ;;  %v2184_v3 = vmul.f32 %v432_v34, %v1918_v4  ;;  %v2197_v21 = vsel %vm266_vm10, 0.098, %v3349_v10  ;;  %v2213_v34 = vsel %vm291_vm13, -0.368, %v3349_v10 }
  0x75   : > { %3399 = vst [vmem:[#allocation21_spill] sm:$0xff] %v2213_v34  ;;  %vm293_vm10 = vcmp.ge.f32.partialorder %v2013_v58, 1.5  ;;  %v433_v58 = vmul.f32 %v427_v53, %v1904_v1  ;;  %v435_v1 = vmul.f32 %v429_v38, %v1902_v0  ;;  %v2301_v53 = vsel %vm291_vm13, 0.439, %v3403_v15 }
  0x76   : > { %v2267_v28 = vsel %vm293_vm10, -0.368, %v3349_v10  ;;  %vm3408_vm13 = vcmp.ge.f32.partialorder %v1999_v51, 1.5 }
  0x77   : > { %3401 = vst [vmem:[#allocation23_spill] sm:$0xff] %v2267_v28 }
  0x78   : > { %305 = vrot.lane.b32.xlu1 %v1918_v4, %s1735_s29  ;;  %303 = vrot.lane.b32.xlu0 %v1920_v5, %s1735_s29 }
  0x7c   : > { %649 = vrot.lane.b32.xlu1 %v1963_v6, %s1732_s16  ;;  %647 = vrot.lane.b32.xlu0 %v1966_v7, %s1732_s16  ;;  %v2253_v7 = vsel %vm289_vm12, -0.368, %v3349_v10 }
  0xbe   : > { %v2005_v55 = vpop.permute.xlu1 %362  ;;  %v2007_v56 = vpop.permute.xlu0 %358 }
  0xbf   : > { %v372_v4 = vrot.slane %v2005_v55, 1  ;;  %v370_v61 = vrot.slane %v2007_v56, 1 }
  0xc2   : > { %v2028_v8 = vpop.permute.xlu1 %364  ;;  %v2040_v16 = vpop.permute.xlu0 %360 }
  0xc3   : > { %v371_v60 = vrot.slane %v2040_v16, 1  ;;  %v373_v24 = vrot.slane %v2028_v8, 1 }
  0xc5   : > { %v380_v37 = vsel %vm376_vm3, %v371_v60, %v372_v4  ;;  %v379_v5 = vsel %vm376_vm3, %v372_v4, %v373_v24  ;;  %v381_v48 = vsel %vm376_vm3, %v370_v61, %v371_v60 }
  0xc6   : > { %v2091_v29 = vpop.permute.xlu1 %368  ;;  %v2093_v30 = vpop.permute.xlu0 %366  ;;  %v385_v4 = vsel %vm3402_vm9, %v2040_v16, %v380_v37  ;;  %vm3404_vm9 = vcmp.ge.f32.partialorder %v1993_v46, 1.5  ;;  %v2306_v16 = vsel %vm292_vm14, 0.439, %v3403_v15  ;;  %v2311_v37 = vsel %vm289_vm12, 0.439, %v3403_v15 }
  0xc7   : > { %v375_v39 = vrot.slane %v2091_v29, 1  ;;  %v374_v50 = vrot.slane %v2093_v30, 1  ;;  %v2295_v32 = vsel %vm3404_vm9, 0.439, %v3403_v15  ;;  %3405 = vst [vmem:[#allocation24_spill] sm:$0xff] %v2311_v37  ;;  %vm3406_vm9 = vcmp.lt.s32.totalorder %v1978_v13, 127 }
  0xc8   : > { %v386_v46 = vsel %vm3406_vm9, %v2005_v55, %v379_v5  ;;  %vm3407_vm0 = vmmov %vm3406_vm9  ;;  %v452_v38 = vmul.f32 %v2081_v26, %v385_v4  ;;  %vm320_vm12 = vcmp.ge.s32.totalorder %v1978_v13, 2 }
  0xc9   : > { %v384_v0 = vsel %vm3407_vm0, %v2007_v56, %v381_v48  ;;  %v382_v44 = vsel %vm376_vm3, %v375_v39, %v370_v61  ;;  %v377_v22 = vsel %vm376_vm3, %v374_v50, %v375_v39  ;;  %v378_v59 = vsel %vm376_vm3, %v373_v24, %v374_v50  ;;  %vm3409_vm14 = vmmov %vm3407_vm0 }
  0xca   : > { %v2138_v41 = vpop.permute.xlu1 %392  ;;  %v2143_v43 = vpop.permute.xlu0 %390  ;;  %v389_v24 = vsel %vm3407_vm0, %v2091_v29, %v382_v44  ;;  %v451_v50 = vmul.f32 %v2179_v62, %v384_v0  ;;  %vm3410_vm9 = vmmov %vm3407_vm0  ;;  %v453_v62 = vmul.f32 %v447_v42, %v386_v46 }
  0xcb   : > { %v403_v19 = vrot.slane %v2138_v41, 1  ;;  %v402_v6 = vrot.slane %v2143_v43, 1  ;;  %v388_v51 = vsel %vm3410_vm9, %v2093_v30, %v377_v22 }
  0xcd   : > { %v412_v28 = vsel %vm376_vm3, %v402_v6, %v403_v19 }
  0xce   : > { %v2186_v63 = vpop.permute.xlu1 %396  ;;  %v2199_v23 = vpop.permute.xlu0 %394  ;;  %v415_v25 = vsel %vm414_vm15, %v2143_v43, %v412_v28  ;;  %v458_v28 = vadd.f32 %v452_v38, %v2166_v2  ;;  %v456_v43 = vmul.f32 %v2117_v35, %v389_v24  ;;  %v2380_v2 = vmul.f32 %v2172_v52, %v388_v51 }
  0xcf   : > { %v405_v34 = vrot.slane %v2186_v63, 1  ;;  %v404_v10 = vrot.slane %v2199_v23, 1  ;;  %v469_v46 = vmul.f32 %v2151_v47, %v415_v25  ;;  %v459_v52 = vadd.f32 %v453_v62, %v435_v1 }
  0xd0   : > { %v462_v47 = vadd.f32 %v456_v43, %v2184_v3 }
  0xd1   : > { %v410_v55 = vsel %vm376_vm3, %v404_v10, %v405_v34  ;;  %v411_v56 = vsel %vm376_vm3, %v403_v19, %v404_v10  ;;  %v2347_v10 = vsel %vm3408_vm13, 0.439, %v3403_v15  ;;  %v387_v19 = vsel %vm3409_vm14, %v2028_v8, %v378_v59 }
  0xd2   : > { %v2236_v27 = vpop.permute.xlu1 %400  ;;  %v2248_v20 = vpop.permute.xlu0 %398  ;;  %v416_v0 = vsel %vm414_vm15, %v2138_v41, %v411_v56  ;;  %v417_v8 = vsel %vm414_vm15, %v2199_v23, %v410_v55  ;;  %v454_v42 = vmul.f32 %v2136_v40, %v387_v19  ;;  %v457_v41 = vadd.f32 %v451_v50, %v433_v58 }
  0xd3   : > { %v406_v26 = vrot.slane %v2248_v20, 1  ;;  %v407_v4 = vrot.slane %v2236_v27, 1  ;;  %v470_v35 = vmul.f32 %v2197_v21, %v416_v0 }
  0xd4   : > { %v475_v24 = vadd.f32 %v469_v46, %v457_v41 }
  0xd5   : > { %v409_v44 = vsel %vm376_vm3, %v405_v34, %v406_v26  ;;  %v413_v23 = vsel %vm376_vm3, %v407_v4, %v402_v6  ;;  %v471_v34 = vmul.f32 %v2206_v33, %v417_v8  ;;  %v408_v58 = vsel %vm376_vm3, %v406_v26, %v407_v4 }
  0xd6   : > { %v2281_v49 = vpop.permute.xlu1 %329  ;;  %v2284_v60 = vpop.permute.xlu0 %327  ;;  %v418_v25 = vsel %vm414_vm15, %v2186_v63, %v409_v44  ;;  %v420_v21 = vsel %vm414_vm15, %v2236_v27, %v413_v23  ;;  %v460_v26 = vadd.f32 %v454_v42, %v2146_v45  ;;  %v419_v3 = vsel %vm414_vm15, %v2248_v20, %v408_v58 }
  0xd7   : > { %v340_v48 = vrot.slane %v2281_v49, 7  ;;  %v339_v61 = vrot.slane %v2284_v60, 7  ;;  %v472_v1 = vmul.f32 %v2241_v11, %v418_v25  ;;  %v3411_v27 = vsel %vm2009_vm5, -0.148, %v2033_v12 }
  0xd8   : > { %v476_v19 = vadd.f32 %v470_v35, %v458_v28  ;;  %v477_v45 = vadd.f32 %v471_v34, %v459_v52  ;;  %v474_v51 = vmul.f32 %v2231_v14, %v420_v21  ;;  %v3412_v11 = vsel %vm2001_vm4, -0.148, %v2218_v36  ;;  %v3416_v52 = vld [vmem:[#allocation13_spill] sm:$0xff] }
  0xd9   : > { %v349_v59 = vsel %vm313_vm1, %v339_v61, %v340_v48  ;;  %v473_v14 = vmul.f32 %v2246_v18, %v419_v3 }
  0xda   : > { %v2335_v5 = vpop.permute.xlu1 %333  ;;  %v2337_v39 = vpop.permute.xlu0 %331  ;;  %v353_v6 = vsel %vm351_vm8, %v2281_v49, %v349_v59 }
  0xdb   : > { %v342_v37 = vrot.slane %v2335_v5, 7  ;;  %v341_v29 = vrot.slane %v2337_v39, 7  ;;  %v494_v50 = vmul.f32 %v3411_v27, %v353_v6  ;;  %v480_v6 = vadd.f32 %v474_v51, %v462_v47  ;;  %v3421_v51 = vld [vmem:[#allocation24_spill] sm:$0xff] }
  0xdd   : > { %v347_v38 = vsel %vm313_vm1, %v341_v29, %v342_v37  ;;  %v348_v0 = vsel %vm313_vm1, %v340_v48, %v341_v29  ;;  %v478_v29 = vadd.f32 %v472_v1, %v460_v26  ;;  %v500_v54 = vadd.f32 %v494_v50, %v476_v19 }
  0xde   : > { %v338_v22 = vpop.permute.xlu1 %337  ;;  %v2373_v30 = vpop.permute.xlu0 %335  ;;  %v355_v63 = vsel %vm351_vm8, %v2335_v5, %v347_v38  ;;  %v354_v59 = vsel %vm351_vm8, %v2337_v39, %v348_v0  ;;  %v3414_v5 = vld [vmem:[#allocation18_spill] sm:$0xff]  ;;  %v509_v0 = vsel %vm293_vm10, 0.439, %v3403_v15  ;;  %vm3475_vm10 = vmmov %vm3407_vm0 }
  0xdf   : > { %v344_v40 = vrot.slane %v338_v22, 7  ;;  %v343_v33 = vrot.slane %v2373_v30, 7  ;;  %v496_v20 = vmul.f32 %v3412_v11, %v355_v63 }
  0xe1   : > { %v350_v62 = vsel %vm313_vm1, %v344_v40, %v339_v61  ;;  %v345_v57 = vsel %vm313_vm1, %v343_v33, %v344_v40  ;;  %v502_v46 = vadd.f32 %v496_v20, %v478_v29 }
  0xe2   : > { %v298_v55 = vpop.permute.xlu1 %297  ;;  %v296_v56 = vpop.permute.xlu0 %295  ;;  %v352_v36 = vsel %vm351_vm8, %v2284_v60, %v350_v62  ;;  %v357_v18 = vsel %vm351_vm8, %v338_v22, %v345_v57  ;;  %v346_v60 = vsel %vm313_vm1, %v342_v37, %v343_v33  ;;  %v3413_v22 = vsel %vm2099_vm7, -0.148, %v2253_v7  ;;  %v3418_v7 = vld [vmem:[#allocation21_spill] sm:$0xff]  ;;  %v3423_v57 = vld [vmem:[#allocation22_spill] sm:$0xff]  ;;  %vm3471_vm7 = vmmov %vm3407_vm0 }
  0xe3   : > { %v308_v49 = vrot.slane %v298_v55, 7  ;;  %v307_v4 = vrot.slane %v296_v56, 7  ;;  %v493_v34 = vmul.f32 %v3413_v22, %v352_v36  ;;  %v3415_v37 = vsel %vm2044_vm11, -0.148, %v3414_v5  ;;  %v3427_v36 = vld [vmem:[#allocation19_spill] sm:$0xff] }
  0xe4   : > { %v498_v40 = vmul.f32 %v3415_v37, %v357_v18  ;;  %v356_v63 = vsel %vm351_vm8, %v2373_v30, %v346_v60  ;;  %v3429_v18 = vld [vmem:[#allocation15_spill] sm:$0xff] }
  0xe5   : > { %v318_v12 = vsel %vm313_vm1, %v307_v4, %v308_v49  ;;  %v499_v27 = vadd.f32 %v493_v34, %v475_v24  ;;  %v461_v24 = vadd.f32 %v2380_v2, %v3423_v57  ;;  %vm3430_vm4 = vcmp.lt.f32.partialorder %v3429_v18, 0.5 }
  0xe6   : > { %v302_v8 = vpop.permute.xlu1 %301  ;;  %v300_v28 = vpop.permute.xlu0 %299  ;;  %v322_v61 = vsel %vm320_vm12, %v298_v55, %v318_v12  ;;  %v3419_v55 = vsel %vm2161_vm6, -0.148, %v3418_v7  ;;  %v504_v62 = vadd.f32 %v498_v40, %v480_v6  ;;  %vm553_vm6 = vcmp.lt.s32.totalorder %v1972_v9, 6 }
  0xe7   : > { %v310_v43 = vrot.slane %v302_v8, 7  ;;  %v309_v48 = vrot.slane %v300_v28, 7  ;;  %v512_v44 = vmul.f32 %v2295_v32, %v322_v61  ;;  %v495_v26 = vmul.f32 %v3419_v55, %v354_v59 }
  0xe8   : > { %v479_v29 = vadd.f32 %v473_v14, %v461_v24  ;;  %v3428_v59 = vmov 0.5019608   ;;  %v3438_v24 = vld [vmem:[#allocation9_spill] sm:$0xff] }
  0xe9   : > { %v316_v42 = vsel %vm313_vm1, %v309_v48, %v310_v43  ;;  %v317_v41 = vsel %vm313_vm1, %v308_v49, %v309_v48  ;;  %v518_v32 = vadd.f32 %v512_v44, %v500_v54  ;;  %v501_v12 = vadd.f32 %v495_v26, %v477_v45  ;;  %v3431_v45 = vld [vmem:[#allocation17_spill] sm:$0xff] }
  0xea   : > { %v324_v23 = vsel %vm320_vm12, %v302_v8, %v316_v42  ;;  %v306_v39 = vpop.permute.xlu1 %305  ;;  %v304_v35 = vpop.permute.xlu0 %303  ;;  %v323_v33 = vsel %vm320_vm12, %v300_v28, %v317_v41  ;;  %v3425_v8 = vld [vmem:[#allocation23_spill] sm:$0xff]  ;;  %v525_v2 = vsel %vm3430_vm4, 0.0627451, %v3428_v59 }
  0xeb   : > { %v514_v38 = vmul.f32 %v2306_v16, %v324_v23  ;;  %v312_v58 = vrot.slane %v306_v39, 7  ;;  %v311_v25 = vrot.slane %v304_v35, 7  ;;  %v2458_v21 = vadd.f32 %v3416_v52, %v518_v32 }
  0xec   : > { %v513_v50 = vmul.f32 %v2301_v53, %v323_v33  ;;  %v3426_v28 = vsel %vm2074_vm2, -0.148, %v3425_v8  ;;  %vm3469_vm2 = vmmov %vm3407_vm0 }
  0xed   : > { %v520_v16 = vadd.f32 %v514_v38, %v502_v46  ;;  %v319_v47 = vsel %vm313_vm1, %v312_v58, %v307_v4  ;;  %v314_v17 = vsel %vm313_vm1, %v311_v25, %v312_v58  ;;  %v315_v3 = vsel %vm313_vm1, %v310_v43, %v311_v25  ;;  %637 = vrot.lane.b32.xlu1 %v2458_v21, %s1732_s16  ;;  %v3420_v4 = vld [vmem:[#allocation14_spill] sm:$0xff]  ;;  %vm3480_vm13 = vmmov %vm3469_vm2 }
  0xee   : > { %v321_v49 = vsel %vm320_vm12, %v296_v56, %v319_v47  ;;  %v326_v1 = vsel %vm320_vm12, %v306_v39, %v314_v17  ;;  %v3422_v56 = vld [vmem:[#allocation12_spill] sm:$0xff]  ;;  %v325_v11 = vsel %vm320_vm12, %v304_v35, %v315_v3  ;;  %v497_v61 = vmul.f32 %v3426_v28, %v356_v63  ;;  %v2716_v8 = vpop.permute.xlu0 %647  ;;  %vm3481_vm9 = vmmov %vm3469_vm2 }
  0xef   : > { %v2483_v19 = vadd.f32 %v3420_v4, %v520_v16  ;;  %v511_v30 = vmul.f32 %v3421_v51, %v321_v49  ;;  %v516_v20 = vmul.f32 %v2347_v10, %v326_v1  ;;  %v519_v54 = vadd.f32 %v513_v50, %v501_v12  ;;  %v2664_v1 = vld [vmem:[%s1896_s3 + $0x18] sm:$0xff]  ;;  %v2686_v50 = vld [vmem:[%s1896_s3 + $0x28] sm:$0xff]  ;;  %v3437_v4 = vld [vmem:[#allocation8_spill] sm:$0xff] }
  0xf0   : > { %v515_v10 = vmul.f32 %v509_v0, %v325_v11  ;;  %v503_v41 = vadd.f32 %v497_v61, %v479_v29  ;;  %vm3432_vm5 = vcmp.lt.f32.partialorder %v3422_v56, 0.5  ;;  %v536_v39 = vrot.slane %v2458_v21, 1  ;;  %v2695_v56 = vld [vmem:[%s1896_s3 + $0x20] sm:$0xff] }
  0xf1   : > { %v517_v43 = vadd.f32 %v511_v30, %v499_v27  ;;  %v522_v48 = vadd.f32 %v516_v20, %v504_v62  ;;  %641 = vrot.lane.b32.xlu1 %v2483_v19, %s1732_s16  ;;  %v2513_v14 = vadd.f32 %v525_v2, %v519_v54  ;;  %v527_v60 = vsel %vm3432_vm5, 0.0627451, %v3428_v59  ;;  %v2673_v27 = vld [vmem:[%s1896_s3 + $0x10] sm:$0xff]  ;;  %v2692_v62 = vpop.permute.xlu1 %649 }
  0xf2   : > { %v521_v46 = vadd.f32 %v515_v10, %v503_v41  ;;  %v538_v34 = vrot.slane %v2483_v19, 1  ;;  %v548_v33 = vrot.slane %v2458_v21, 2  ;;  %v550_v55 = vrot.slane %v2483_v19, 2 }
  0xf3   : > { %v2501_v44 = vadd.f32 %v3427_v36, %v517_v43  ;;  %v2507_v42 = vadd.f32 %v3431_v45, %v522_v48  ;;  %v537_v22 = vrot.slane %v2513_v14, 1  ;;  %v549_v7 = vrot.slane %v2513_v14, 2 }
  0xf4   : > { %v2522_v32 = vadd.f32 %v527_v60, %v521_v46  ;;  %v561_v51 = vrot.slane %v3437_v4, 1  ;;  %v562_v30 = vrot.slane %v2673_v27, 1  ;;  %v563_v11 = vrot.slane %v2664_v1, 1 }
  0xf5   : > { %635 = vrot.lane.b32.xlu0 %v2501_v44, %s1732_s16  ;;  %645 = vrot.lane.b32.xlu1 %v2507_v42, %s1732_s16  ;;  %v535_v23 = vrot.slane %v2501_v44, 1  ;;  %v2548_v38 = vsel %vm376_vm3, %v537_v22, %v538_v34  ;;  %v540_v25 = vrot.slane %v2507_v42, 1  ;;  %v2556_v6 = vsel %vm376_vm3, %v536_v39, %v537_v22 }
  0xf6   : > { %v539_v58 = vrot.slane %v2522_v32, 1  ;;  %v547_v52 = vrot.slane %v2501_v44, 2  ;;  %v2603_v26 = vsel %vm553_vm6, %v549_v7, %v550_v55  ;;  %v551_v16 = vrot.slane %v2522_v32, 2 }
  0xf7   : > { %v2538_v35 = vsel %vm376_vm3, %v535_v23, %v536_v39  ;;  %v2576_v40 = vsel %vm376_vm3, %v540_v25, %v535_v23  ;;  %3434 = vst [vmem:[#allocation13_spill] sm:$0xff] %v2603_v26  ;;  %v552_v47 = vrot.slane %v2507_v42, 2  ;;  %v2611_v17 = vsel %vm553_vm6, %v548_v33, %v549_v7 }
  0xf8   : > { %v2562_v5 = vsel %vm376_vm3, %v539_v58, %v540_v25  ;;  %v2568_v37 = vsel %vm376_vm3, %v538_v34, %v539_v58  ;;  %v2593_v31 = vsel %vm553_vm6, %v547_v52, %v548_v33  ;;  %v2623_v49 = vsel %vm553_vm6, %v550_v55, %v551_v16 }
  0xf9   : > { %639 = vrot.lane.b32.xlu0 %v2513_v14, %s1732_s16  ;;  %903 = vrot.lane.b32.xlu1 %v2501_v44, %s1733_s18  ;;  %3433 = vst [vmem:[#allocation18_spill] sm:$0xff] %v2593_v31  ;;  %v2617_v63 = vsel %vm553_vm6, %v551_v16, %v552_v47  ;;  %v2631_v3 = vsel %vm553_vm6, %v552_v47, %v547_v52  ;;  %v564_v20 = vrot.slane %v2695_v56, 1  ;;  %v560_v12 = vrot.slane %v3438_v24, 1 }
  0xfa   : > { %3435 = vst [vmem:[#allocation20_spill] sm:$0xff] %v2617_v63  ;;  %3436 = vst [vmem:[#allocation21_spill] sm:$0xff] %v2631_v3  ;;  %v2701_v0 = vsel %vm376_vm3, %v561_v51, %v562_v30  ;;  %v2736_v29 = vsel %vm376_vm3, %v562_v30, %v563_v11  ;;  %v565_v10 = vrot.slane %v2686_v50, 1 }
  0xfb   : > { %v2714_v53 = vsel %vm376_vm3, %v563_v11, %v564_v20  ;;  %v2724_v61 = vsel %vm376_vm3, %v560_v12, %v561_v51 }
  0xfc   : > { %v2759_v2 = vsel %vm376_vm3, %v565_v10, %v560_v12  ;;  %v2777_v23 = vsel %vm376_vm3, %v564_v20, %v565_v10  ;;  %v573_v12 = vrot.slane %v3437_v4, 2  ;;  %v574_v10 = vrot.slane %v2673_v27, 2 }
  0xfd   : > { %643 = vrot.lane.b32.xlu0 %v2522_v32, %s1732_s16  ;;  %907 = vrot.lane.b32.xlu1 %v2513_v14, %s1733_s18 }
 0x101   : > { %905 = vrot.lane.b32.xlu0 %v2458_v21, %s1733_s18  ;;  %911 = vrot.lane.b32.xlu1 %v2522_v32, %s1733_s18 }
 0x105   : > { %909 = vrot.lane.b32.xlu0 %v2483_v19, %s1733_s18  ;;  %709 = vrot.lane.b32.xlu1 %v2538_v35, %s1732_s16 }
 0x109   : > { %913 = vrot.lane.b32.xlu0 %v2507_v42, %s1733_s18  ;;  %713 = vrot.lane.b32.xlu1 %v2548_v38, %s1732_s16 }
 0x10d   : > { %711 = vrot.lane.b32.xlu0 %v2556_v6, %s1732_s16  ;;  %717 = vrot.lane.b32.xlu1 %v2562_v5, %s1732_s16 }
 0x111   : > { %715 = vrot.lane.b32.xlu0 %v2568_v37, %s1732_s16  ;;  %781 = vrot.lane.b32.xlu1 %v2538_v35, %s1734_s23 }
 0x115   : > { %719 = vrot.lane.b32.xlu0 %v2576_v40, %s1732_s16  ;;  %785 = vrot.lane.b32.xlu1 %v2548_v38, %s1734_s23 }
 0x119   : > { %783 = vrot.lane.b32.xlu0 %v2556_v6, %s1734_s23  ;;  %789 = vrot.lane.b32.xlu1 %v2562_v5, %s1734_s23 }
 0x11d   : > { %787 = vrot.lane.b32.xlu0 %v2568_v37, %s1734_s23  ;;  %975 = vrot.lane.b32.xlu1 %v2593_v31, %s1732_s16 }
 0x121   : > { %791 = vrot.lane.b32.xlu0 %v2576_v40, %s1734_s23  ;;  %979 = vrot.lane.b32.xlu1 %v2603_v26, %s1732_s16 }
 0x125   : > { %977 = vrot.lane.b32.xlu0 %v2611_v17, %s1732_s16  ;;  %983 = vrot.lane.b32.xlu1 %v2617_v63, %s1732_s16 }
 0x129   : > { %981 = vrot.lane.b32.xlu0 %v2623_v49, %s1732_s16  ;;  %1047 = vrot.lane.b32.xlu1 %v2593_v31, %s1734_s23 }
 0x12d   : > { %985 = vrot.lane.b32.xlu0 %v2631_v3, %s1732_s16  ;;  %1051 = vrot.lane.b32.xlu1 %v2603_v26, %s1734_s23 }
 0x131   : > { %1049 = vrot.lane.b32.xlu0 %v2611_v17, %s1734_s23  ;;  %1055 = vrot.lane.b32.xlu1 %v2617_v63, %s1734_s23 }
 0x135   : > { %1053 = vrot.lane.b32.xlu0 %v2623_v49, %s1734_s23  ;;  %1119 = vrot.lane.b32.xlu1 %v2538_v35, %s1733_s18 }
 0x139   : > { %1057 = vrot.lane.b32.xlu0 %v2631_v3, %s1734_s23  ;;  %1123 = vrot.lane.b32.xlu1 %v2548_v38, %s1733_s18 }
 0x13d   : > { %1121 = vrot.lane.b32.xlu0 %v2556_v6, %s1733_s18  ;;  %1127 = vrot.lane.b32.xlu1 %v2562_v5, %s1733_s18 }
 0x141   : > { %1125 = vrot.lane.b32.xlu0 %v2568_v37, %s1733_s18  ;;  %1191 = vrot.lane.b32.xlu1 %v2538_v35, %s1735_s29 }
 0x145   : > { %1129 = vrot.lane.b32.xlu0 %v2576_v40, %s1733_s18  ;;  %1195 = vrot.lane.b32.xlu1 %v2548_v38, %s1735_s29 }
 0x149   : > { %1193 = vrot.lane.b32.xlu0 %v2556_v6, %s1735_s29  ;;  %653 = vrot.lane.b32.xlu1 %v2664_v1, %s1732_s16 }
 0x14d   : > { %1197 = vrot.lane.b32.xlu0 %v2568_v37, %s1735_s29  ;;  %1201 = vrot.lane.b32.xlu1 %v2576_v40, %s1735_s29 }
 0x151   : > { %651 = vrot.lane.b32.xlu0 %v2673_v27, %s1732_s16  ;;  %1265 = vrot.lane.b32.xlu1 %v2611_v17, %s1733_s18 }
 0x155   : > { %1199 = vrot.lane.b32.xlu0 %v2562_v5, %s1735_s29  ;;  %1269 = vrot.lane.b32.xlu1 %v2623_v49, %s1733_s18 }
 0x159   : > { %1263 = vrot.lane.b32.xlu0 %v2593_v31, %s1733_s18  ;;  %657 = vrot.lane.b32.xlu1 %v2686_v50, %s1732_s16 }
 0x15d   : > { %1267 = vrot.lane.b32.xlu0 %v2603_v26, %s1733_s18  ;;  %723 = vrot.lane.b32.xlu1 %v2701_v0, %s1732_s16 }
 0x15f   : > { %v2707_v57 = vpop.permute.xlu1 %637 }
 0x161   : > { %655 = vrot.lane.b32.xlu0 %v2695_v56, %s1732_s16  ;;  %727 = vrot.lane.b32.xlu1 %v2714_v53, %s1732_s16 }
 0x163   : > { %v2720_v28 = vpop.permute.xlu1 %641 }
 0x165   : > { %721 = vrot.lane.b32.xlu0 %v2724_v61, %s1732_s16  ;;  %1273 = vrot.lane.b32.xlu1 %v2631_v3, %s1733_s18 }
 0x167   : > { %v2730_v43 = vpop.permute.xlu0 %635  ;;  %v2732_v48 = vpop.permute.xlu1 %645 }
 0x169   : > { %725 = vrot.lane.b32.xlu0 %v2736_v29, %s1732_s16  ;;  %1337 = vrot.lane.b32.xlu1 %v2611_v17, %s1735_s29 }
 0x16b   : > { %v2742_v54 = vpop.permute.xlu0 %639  ;;  %v2744_v36 = vpop.permute.xlu1 %903 }
 0x16c   : > { %3439 = vst [vmem:[#allocation14_spill] sm:$0xff] %v2744_v36 }
 0x16d   : > { %1271 = vrot.lane.b32.xlu0 %v2617_v63, %s1733_s18  ;;  %1341 = vrot.lane.b32.xlu1 %v2623_v49, %s1735_s29 }
 0x16f   : > { %v2751_v59 = vpop.permute.xlu0 %643  ;;  %v2753_v18 = vpop.permute.xlu1 %907 }
 0x170   : > { %3440 = vst [vmem:[#allocation24_spill] sm:$0xff] %v2753_v18  ;;  %v577_v18 = vrot.slane %v2686_v50, 2 }
 0x171   : > { %1335 = vrot.lane.b32.xlu0 %v2593_v31, %s1735_s29  ;;  %731 = vrot.lane.b32.xlu1 %v2759_v2, %s1732_s16  ;;  %v584_v31 = vsub.f32 %v2538_v35, %v2501_v44  ;;  %v586_v35 = vsub.f32 %v2548_v38, %v2513_v14 }
 0x173   : > { %v2763_v45 = vpop.permute.xlu0 %905  ;;  %v2765_v41 = vpop.permute.xlu1 %911  ;;  %v596_v38 = vmul.f32 %v584_v31, %v584_v31  ;;  %v598_v31 = vmul.f32 %v586_v35, %v586_v35 }
 0x174   : > { %3441 = vst [vmem:[#allocation12_spill] sm:$0xff] %v2763_v45  ;;  %3442 = vst [vmem:[#allocation22_spill] sm:$0xff] %v2765_v41 }
 0x175   : > { %1339 = vrot.lane.b32.xlu0 %v2603_v26, %s1735_s29  ;;  %795 = vrot.lane.b32.xlu1 %v2701_v0, %s1734_s23 }
 0x177   : > { %v2771_v46 = vpop.permute.xlu0 %909  ;;  %v2773_v60 = vpop.permute.xlu1 %709 }
 0x178   : > { %3443 = vst [vmem:[#allocation16_spill] sm:$0xff] %v2771_v46 }
 0x179   : > { %729 = vrot.lane.b32.xlu0 %v2777_v23, %s1732_s16  ;;  %799 = vrot.lane.b32.xlu1 %v2714_v53, %s1734_s23 }
 0x17b   : > { %v2783_v39 = vpop.permute.xlu0 %913  ;;  %v2785_v22 = vpop.permute.xlu1 %713 }
 0x17c   : > { %3444 = vst [vmem:[#allocation23_spill] sm:$0xff] %v2783_v39 }
 0x17d   : > { %793 = vrot.lane.b32.xlu0 %v2724_v61, %s1734_s23  ;;  %1345 = vrot.lane.b32.xlu1 %v2631_v3, %s1735_s29 }
 0x17f   : > { %v2791_v34 = vpop.permute.xlu0 %711  ;;  %v2793_v58 = vpop.permute.xlu1 %717 }
 0x181   : > { %797 = vrot.lane.b32.xlu0 %v2736_v29, %s1734_s23  ;;  %803 = vrot.lane.b32.xlu1 %v2759_v2, %s1734_s23 }
 0x183   : > { %v2799_v25 = vpop.permute.xlu0 %715  ;;  %v782_v52 = vpop.permute.xlu1 %781 }
 0x184   : > { %v805_v55 = vsub.f32 %v782_v52, %v2501_v44 }
 0x185   : > { %1343 = vrot.lane.b32.xlu0 %v2617_v63, %s1735_s29  ;;  %917 = vrot.lane.b32.xlu1 %v3437_v4, %s1733_s18  ;;  %v575_v4 = vrot.slane %v2664_v1, 2 }
 0x186   : > { %v817_v11 = vmul.f32 %v805_v55, %v805_v55  ;;  %v2830_v55 = vsel %vm553_vm6, %v573_v12, %v574_v10 }
 0x187   : > { %v2805_v33 = vpop.permute.xlu0 %719  ;;  %v786_v7 = vpop.permute.xlu1 %785 }
 0x188   : > { %v807_v16 = vsub.f32 %v786_v7, %v2513_v14 }
 0x189   : > { %801 = vrot.lane.b32.xlu0 %v2777_v23, %s1734_s23  ;;  %921 = vrot.lane.b32.xlu1 %v2664_v1, %s1733_s18 }
 0x18a   : > { %v819_v47 = vmul.f32 %v807_v16, %v807_v16 }
 0x18b   : > { %v2813_v51 = vpop.permute.xlu0 %783  ;;  %v790_v30 = vpop.permute.xlu1 %789 }
 0x18c   : > { %3445 = vst [vmem:[#allocation19_spill] sm:$0xff] %v2813_v51  ;;  %v809_v20 = vsub.f32 %v790_v30, %v2522_v32  ;;  %v823_v52 = vadd.f32 %v819_v47, %v817_v11  ;;  %v576_v30 = vrot.slane %v2695_v56, 2 }
 0x18d   : > { %915 = vrot.lane.b32.xlu0 %v3438_v24, %s1733_s18  ;;  %925 = vrot.lane.b32.xlu1 %v2686_v50, %s1733_s18 }
 0x18e   : > { %v821_v7 = vmul.f32 %v809_v20, %v809_v20 }
 0x18f   : > { %v2822_v41 = vpop.permute.xlu0 %787  ;;  %v976_v16 = vpop.permute.xlu1 %975 }
 0x190   : > { %3446 = vst [vmem:[#allocation15_spill] sm:$0xff] %v2822_v41  ;;  %v2824_v36 = vadd.f32 %v823_v52, %v821_v7  ;;  %v999_v47 = vsub.f32 %v976_v16, %v2501_v44  ;;  %v572_v52 = vrot.slane %v3438_v24, 2 }
 0x191   : > { %919 = vrot.lane.b32.xlu0 %v2673_v27, %s1733_s18  ;;  %989 = vrot.lane.b32.xlu1 %v2830_v55, %s1732_s16 }
 0x192   : > { %3447 = vst [vmem:[#allocation17_spill] sm:$0xff] %v2824_v36  ;;  %v2845_v36 = vsel %vm553_vm6, %v575_v4, %v576_v30  ;;  %v1011_v16 = vmul.f32 %v999_v47, %v999_v47  ;;  %v2852_v24 = vsel %vm553_vm6, %v572_v52, %v573_v12  ;;  %v2859_v15 = vsel %vm553_vm6, %v577_v18, %v572_v52 }
 0x193   : > { %v2837_v11 = vpop.permute.xlu0 %791  ;;  %v980_v20 = vpop.permute.xlu1 %979 }
 0x194   : > { %3448 = vst [vmem:[#allocation8_spill] sm:$0xff] %v2837_v11  ;;  %v1001_v7 = vsub.f32 %v980_v20, %v2513_v14 }
 0x195   : > { %923 = vrot.lane.b32.xlu0 %v2695_v56, %s1733_s18  ;;  %993 = vrot.lane.b32.xlu1 %v2845_v36, %s1732_s16 }
 0x196   : > { %v1013_v13 = vmul.f32 %v1001_v7, %v1001_v7 }
 0x197   : > { %v978_v39 = vpop.permute.xlu0 %977  ;;  %v984_v45 = vpop.permute.xlu1 %983 }
 0x198   : > { %v1017_v20 = vadd.f32 %v1013_v13, %v1011_v16  ;;  %v1003_v63 = vsub.f32 %v984_v45, %v2522_v32  ;;  %v1000_v46 = vsub.f32 %v978_v39, %v2458_v21  ;;  %v2867_v13 = vsel %vm553_vm6, %v574_v10, %v575_v4 }
 0x199   : > { %987 = vrot.lane.b32.xlu0 %v2852_v24, %s1732_s16  ;;  %997 = vrot.lane.b32.xlu1 %v2859_v15, %s1732_s16  ;;  %v2879_v10 = vsel %vm553_vm6, %v576_v30, %v577_v18 }
 0x19a   : > { %v1015_v47 = vmul.f32 %v1003_v63, %v1003_v63  ;;  %v1012_v52 = vmul.f32 %v1000_v46, %v1000_v46  ;;  %3450 = vst [vmem:[#allocation25_spill] sm:$0xff] %v2879_v10 }
 0x19b   : > { %v982_v7 = vpop.permute.xlu0 %981  ;;  %v1048_v3 = vpop.permute.xlu1 %1047 }
 0x19c   : > { %v1002_v12 = vsub.f32 %v982_v7, %v2483_v19  ;;  %v2869_v45 = vadd.f32 %v1017_v20, %v1015_v47  ;;  %v1071_v63 = vsub.f32 %v1048_v3, %v2501_v44 }
 0x19d   : > { %991 = vrot.lane.b32.xlu0 %v2867_v13, %s1732_s16  ;;  %1061 = vrot.lane.b32.xlu1 %v2830_v55, %s1734_s23 }
 0x19e   : > { %3449 = vst [vmem:[#allocation9_spill] sm:$0xff] %v2869_v45  ;;  %v1014_v16 = vmul.f32 %v1002_v12, %v1002_v12  ;;  %v1083_v20 = vmul.f32 %v1071_v63, %v1071_v63 }
 0x19f   : > { %v986_v39 = vpop.permute.xlu0 %985  ;;  %v1052_v11 = vpop.permute.xlu1 %1051 }
 0x1a0   : > { %v1018_v26 = vadd.f32 %v1014_v16, %v1012_v52  ;;  %v1004_v7 = vsub.f32 %v986_v39, %v2507_v42  ;;  %v1073_v4 = vsub.f32 %v1052_v11, %v2513_v14 }
 0x1a1   : > { %995 = vrot.lane.b32.xlu0 %v2879_v10, %s1732_s16  ;;  %1065 = vrot.lane.b32.xlu1 %v2845_v36, %s1734_s23 }
 0x1a2   : > { %v1016_v46 = vmul.f32 %v1004_v7, %v1004_v7  ;;  %v1085_v3 = vmul.f32 %v1073_v4, %v1073_v4 }
 0x1a3   : > { %v1050_v47 = vpop.permute.xlu0 %1049  ;;  %v1056_v52 = vpop.permute.xlu1 %1055 }
 0x1a4   : > { %v2886_v12 = vadd.f32 %v1018_v26, %v1016_v46  ;;  %v1089_v16 = vadd.f32 %v1085_v3, %v1083_v20  ;;  %v1075_v9 = vsub.f32 %v1056_v52, %v2522_v32  ;;  %v1072_v18 = vsub.f32 %v1050_v47, %v2458_v21 }
 0x1a5   : > { %1059 = vrot.lane.b32.xlu0 %v2852_v24, %s1734_s23  ;;  %1069 = vrot.lane.b32.xlu1 %v2859_v15, %s1734_s23 }
 0x1a6   : > { %3451 = vst [vmem:[#allocation26_spill] sm:$0xff] %v2886_v12  ;;  %v1087_v30 = vmul.f32 %v1075_v9, %v1075_v9  ;;  %v1084_v26 = vmul.f32 %v1072_v18, %v1072_v18 }
 0x1a7   : > { %v1054_v11 = vpop.permute.xlu0 %1053  ;;  %v1120_v39 = vpop.permute.xlu1 %1119 }
 0x1a8   : > { %v1074_v63 = vsub.f32 %v1054_v11, %v2483_v19  ;;  %v2895_v7 = vadd.f32 %v1089_v16, %v1087_v30  ;;  %v1143_v46 = vsub.f32 %v1120_v39, %v2501_v44 }
 0x1a9   : > { %1063 = vrot.lane.b32.xlu0 %v2867_v13, %s1734_s23  ;;  %1133 = vrot.lane.b32.xlu1 %v2701_v0, %s1733_s18 }
 0x1aa   : > { %3452 = vst [vmem:[#allocation27_spill] sm:$0xff] %v2895_v7  ;;  %v1086_v4 = vmul.f32 %v1074_v63, %v1074_v63  ;;  %v1155_v18 = vmul.f32 %v1143_v46, %v1143_v46 }
 0x1ab   : > { %v1058_v20 = vpop.permute.xlu0 %1057  ;;  %v1124_v52 = vpop.permute.xlu1 %1123 }
 0x1ac   : > { %v1090_v3 = vadd.f32 %v1086_v4, %v1084_v26  ;;  %v1076_v47 = vsub.f32 %v1058_v20, %v2507_v42  ;;  %v1145_v9 = vsub.f32 %v1124_v52, %v2513_v14 }
 0x1ad   : > { %1067 = vrot.lane.b32.xlu0 %v2879_v10, %s1734_s23  ;;  %1137 = vrot.lane.b32.xlu1 %v2714_v53, %s1733_s18 }
 0x1ae   : > { %v1088_v16 = vmul.f32 %v1076_v47, %v1076_v47  ;;  %v1157_v30 = vmul.f32 %v1145_v9, %v1145_v9 }
 0x1af   : > { %v1122_v11 = vpop.permute.xlu0 %1121  ;;  %v1128_v39 = vpop.permute.xlu1 %1127 }
 0x1b0   : > { %v2908_v63 = vadd.f32 %v1090_v3, %v1088_v16  ;;  %v1161_v7 = vadd.f32 %v1157_v30, %v1155_v18  ;;  %v1147_v26 = vsub.f32 %v1128_v39, %v2522_v32  ;;  %v1144_v4 = vsub.f32 %v1122_v11, %v2458_v21  ;;  %v2927_v39 = vld [vmem:[%s1896_s3 + $0x8] sm:$0xff] }
 0x1b1   : > { %1131 = vrot.lane.b32.xlu0 %v2724_v61, %s1733_s18  ;;  %1141 = vrot.lane.b32.xlu1 %v2759_v2, %s1733_s18  ;;  %v587_v18 = vsub.f32 %v2568_v37, %v2483_v19 }
 0x1b2   : > { %3453 = vst [vmem:[#allocation28_spill] sm:$0xff] %v2908_v63  ;;  %v1159_v20 = vmul.f32 %v1147_v26, %v1147_v26  ;;  %v1156_v9 = vmul.f32 %v1144_v4, %v1144_v4  ;;  %v593_v26 = vsub.f32 %v2714_v53, %v2664_v1 }
 0x1b3   : > { %v1126_v47 = vpop.permute.xlu0 %1125  ;;  %v1192_v52 = vpop.permute.xlu1 %1191 }
 0x1b4   : > { %v1146_v46 = vsub.f32 %v1126_v47, %v2483_v19  ;;  %v2917_v3 = vadd.f32 %v1161_v7, %v1159_v20  ;;  %v1215_v30 = vsub.f32 %v1192_v52, %v2501_v44  ;;  %v591_v7 = vsub.f32 %v2701_v0, %v2927_v39  ;;  %v2940_v52 = vld [vmem:[%s1896_s3] sm:$0xff] }
 0x1b5   : > { %1135 = vrot.lane.b32.xlu0 %v2736_v29, %s1733_s18  ;;  %1205 = vrot.lane.b32.xlu1 %v2701_v0, %s1735_s29  ;;  %v590_v0 = vsub.f32 %v2724_v61, %v2940_v52  ;;  %v609_v45 = vand.u32 2147483647, %v593_v26 }
 0x1b6   : > { %3454 = vst [vmem:[#allocation29_spill] sm:$0xff] %v2917_v3  ;;  %v1158_v16 = vmul.f32 %v1146_v46, %v1146_v46  ;;  %v585_v46 = vsub.f32 %v2556_v6, %v2458_v21  ;;  %v592_v3 = vsub.f32 %v2736_v29, %v2673_v27 }
 0x1b7   : > { %v1130_v11 = vpop.permute.xlu0 %1129  ;;  %v1196_v47 = vpop.permute.xlu1 %1195 }
 0x1b8   : > { %v1162_v20 = vadd.f32 %v1158_v16, %v1156_v9  ;;  %v1148_v4 = vsub.f32 %v1130_v11, %v2507_v42  ;;  %v1217_v37 = vsub.f32 %v1196_v47, %v2513_v14  ;;  %v599_v16 = vmul.f32 %v587_v18, %v587_v18 }
 0x1b9   : > { %1139 = vrot.lane.b32.xlu0 %v2777_v23, %s1733_s18  ;;  %1209 = vrot.lane.b32.xlu1 %v2714_v53, %s1735_s29  ;;  %v1227_v11 = vmul.f32 %v1215_v30, %v1215_v30  ;;  %v607_v47 = vand.u32 2147483647, %v591_v7  ;;  %v597_v41 = vmul.f32 %v585_v46, %v585_v46  ;;  %v606_v53 = vand.u32 2147483647, %v590_v0 }
 0x1ba   : > { %v1160_v9 = vmul.f32 %v1148_v4, %v1148_v4  ;;  %v1229_v6 = vmul.f32 %v1217_v37, %v1217_v37  ;;  %v589_v4 = vsub.f32 %v2576_v40, %v2507_v42  ;;  %v608_v18 = vand.u32 2147483647, %v592_v3 }
 0x1bb   : > { %v1194_v63 = vpop.permute.xlu0 %1193  ;;  %v2950_v51 = vpop.permute.xlu1 %653  ;;  %v595_v30 = vsub.f32 %v2759_v2, %v2686_v50  ;;  %v603_v26 = vadd.f32 %v599_v16, %v597_v41  ;;  %v594_v40 = vsub.f32 %v2777_v23, %v2695_v56  ;;  %v666_v3 = vsub.f32 %v2692_v62, %v2927_v39 }
 0x1bc   : > { %v2948_v12 = vadd.f32 %v1162_v20, %v1160_v9  ;;  %v2956_v10 = vadd.f32 %v1229_v6, %v1227_v11  ;;  %v1216_v7 = vsub.f32 %v1194_v63, %v2458_v21  ;;  %v2973_v46 = vadd.f32 %v609_v45, %v607_v47 }
 0x1bd   : > { %1203 = vrot.lane.b32.xlu0 %v2724_v61, %s1735_s29  ;;  %1213 = vrot.lane.b32.xlu1 %v2759_v2, %s1735_s29  ;;  %v860_v61 = vsub.f32 %v2830_v55, %v2927_v39  ;;  %v662_v63 = vsub.f32 %v2720_v28, %v2483_v19  ;;  %v588_v41 = vsub.f32 %v2562_v5, %v2522_v32  ;;  %v2991_v6 = vand.u32 2147483647, %v595_v30 }
 0x1be   : > { %v601_v0 = vmul.f32 %v589_v4, %v589_v4  ;;  %v660_v62 = vsub.f32 %v2707_v57, %v2458_v21  ;;  %v664_v45 = vsub.f32 %v2732_v48, %v2507_v42  ;;  %v1228_v28 = vmul.f32 %v1216_v7, %v1216_v7 }
 0x1bf   : > { %v1198_v20 = vpop.permute.xlu0 %1197  ;;  %v1202_v37 = vpop.permute.xlu1 %1201  ;;  %v2989_v5 = vadd.f32 %v608_v18, %v606_v53  ;;  %v2995_v4 = vand.u32 2147483647, %v594_v40  ;;  %v602_v48 = vadd.f32 %v598_v31, %v596_v38  ;;  %v600_v7 = vmul.f32 %v588_v41, %v588_v41 }
 0x1c0   : > { %v1218_v2 = vsub.f32 %v1198_v20, %v2483_v19  ;;  %v1220_v9 = vsub.f32 %v1202_v37, %v2507_v42  ;;  %v605_v11 = vadd.f32 %v603_v26, %v601_v0  ;;  %v682_v35 = vand.u32 2147483647, %v666_v3 }
 0x1c1   : > { %1207 = vrot.lane.b32.xlu0 %v2736_v29, %s1735_s29  ;;  %1277 = vrot.lane.b32.xlu1 %v2830_v55, %s1733_s18  ;;  %v674_v29 = vmul.f32 %v662_v63, %v662_v63  ;;  %v672_v53 = vmul.f32 %v660_v62, %v660_v62  ;;  %v676_v18 = vmul.f32 %v664_v45, %v664_v45 }
 0x1c2   : > { %v1230_v16 = vmul.f32 %v1218_v2, %v1218_v2  ;;  %v1232_v20 = vmul.f32 %v1220_v9, %v1220_v9  ;;  %v2999_v2 = vsub.f32 %v2611_v17, %v2458_v21  ;;  %v661_v30 = vsub.f32 %v2742_v54, %v2513_v14 }
 0x1c3   : > { %v2993_v47 = vpop.permute.xlu0 %651  ;;  %v1266_v37 = vpop.permute.xlu1 %1265  ;;  %v617_v40 = vmul.f32 -0.005, %v605_v11  ;;  %v736_v63 = vsub.f32 %v2799_v25, %v2483_v19  ;;  %v668_v17 = vsub.f32 %v2950_v51, %v2664_v1  ;;  %v678_v38 = vadd.f32 %v674_v29, %v672_v53 }
 0x1c4   : > { %v1234_v57 = vadd.f32 %v1230_v16, %v1228_v28  ;;  %v1288_v3 = vsub.f32 %v1266_v37, %v2458_v21  ;;  %v659_v41 = vsub.f32 %v2730_v43, %v2501_v44  ;;  %v663_v54 = vsub.f32 %v2751_v59, %v2522_v32 }
 0x1c5   : > { %1211 = vrot.lane.b32.xlu0 %v2777_v23, %s1735_s29  ;;  %1281 = vrot.lane.b32.xlu1 %v2845_v36, %s1733_s18  ;;  %v604_v62 = vadd.f32 %v602_v48, %v600_v7  ;;  %v734_v25 = vsub.f32 %v2791_v34, %v2458_v21  ;;  %v738_v51 = vsub.f32 %v2805_v33, %v2507_v42  ;;  %v684_v11 = vand.u32 2147483647, %v668_v17 }
 0x1c6   : > { %v3005_v26 = vadd.f32 %v1234_v57, %v1232_v20  ;;  %v665_v43 = vsub.f32 %v2716_v8, %v2940_v52  ;;  %v680_v28 = vadd.f32 %v678_v38, %v676_v18  ;;  %v673_v59 = vmul.f32 %v661_v30, %v661_v30 }
 0x1c7   : > { %v1200_v23 = vpop.permute.xlu0 %1199  ;;  %v1270_v9 = vpop.permute.xlu1 %1269  ;;  %v748_v31 = vmul.f32 %v736_v63, %v736_v63  ;;  %v1300_v34 = vmul.f32 %v1288_v3, %v1288_v3  ;;  %v620_v33 = vmul.f32 1.442695, %v617_v40  ;;  %v671_v20 = vmul.f32 %v659_v41, %v659_v41 }
 0x1c8   : > { %v1219_v0 = vsub.f32 %v1200_v23, %v2522_v32  ;;  %v1290_v45 = vsub.f32 %v1270_v9, %v2483_v19  ;;  %v675_v37 = vmul.f32 %v663_v54, %v663_v54  ;;  %v746_v53 = vmul.f32 %v734_v25, %v734_v25 }
 0x1c9   : > { %1275 = vrot.lane.b32.xlu0 %v2852_v24, %s1733_s18  ;;  %1285 = vrot.lane.b32.xlu1 %v2859_v15, %s1733_s18  ;;  %v750_v8 = vmul.f32 %v738_v51, %v738_v51  ;;  %v692_v63 = vmul.f32 -0.005, %v680_v28  ;;  %v735_v17 = vsub.f32 %v2785_v22, %v2513_v14  ;;  %v667_v40 = vsub.f32 %v2993_v47, %v2673_v27 }
 0x1ca   : > { %v1231_v16 = vmul.f32 %v1219_v0, %v1219_v0  ;;  %v1302_v29 = vmul.f32 %v1290_v45, %v1290_v45  ;;  %v677_v3 = vadd.f32 %v673_v59, %v671_v20  ;;  %v752_v23 = vadd.f32 %v748_v31, %v746_v53  ;;  %v3455_v59 = vld [vmem:[#allocation25_spill] sm:$0xff] }
 0x1cb   : > { %v1264_v57 = vpop.permute.xlu0 %1263  ;;  %v658_v7 = vpop.permute.xlu1 %657  ;;  %v688_v38 = vadd.f32 %v684_v11, %v682_v35  ;;  %v856_v0 = vsub.f32 %v2623_v49, %v2483_v19  ;;  %v733_v9 = vsub.f32 %v2773_v60, %v2501_v44  ;;  %v737_v22 = vsub.f32 %v2793_v58, %v2522_v32 }
 0x1cc   : > { %v3031_v48 = vadd.f32 %v2956_v10, %v1231_v16  ;;  %v3033_v18 = vadd.f32 %v1302_v29, %v1300_v34  ;;  %v670_v30 = vsub.f32 %v658_v7, %v2686_v50  ;;  %v1287_v10 = vsub.f32 %v1264_v57, %v2501_v44 }
 0x1cd   : > { %1279 = vrot.lane.b32.xlu0 %v2867_v13, %s1733_s18  ;;  %1349 = vrot.lane.b32.xlu1 %v2830_v55, %s1735_s29  ;;  %v679_v51 = vadd.f32 %v677_v3, %v675_v37  ;;  %v754_v45 = vadd.f32 %v752_v23, %v750_v8  ;;  %v747_v16 = vmul.f32 %v735_v17, %v735_v17  ;;  %v683_v49 = vand.u32 2147483647, %v667_v40 }
 0x1ce   : > { %v686_v41 = vand.u32 2147483647, %v670_v30  ;;  %v1299_v31 = vmul.f32 %v1287_v10, %v1287_v10  ;;  %v616_v60 = vmul.f32 -0.005, %v604_v62  ;;  %1576 = vpow2.f32 %v620_v33  ;;  %v3457_v10 = vld [vmem:[#allocation10_spill] sm:$0xff] }
 0x1cf   : > { %v1268_v54 = vpop.permute.xlu0 %1267  ;;  %v724_v25 = vpop.permute.xlu1 %723  ;;  %v681_v58 = vand.u32 2147483647, %v665_v43  ;;  %v695_v34 = vmul.f32 1.442695, %v692_v63  ;;  %v745_v57 = vmul.f32 %v733_v9, %v733_v9  ;;  %v749_v20 = vmul.f32 %v737_v22, %v737_v22  ;;  %v3456_v43 = vld [vmem:[#allocation15_spill] sm:$0xff] }
 0x1d0   : > { %v1289_v47 = vsub.f32 %v1268_v54, %v2513_v14  ;;  %v3052_v28 = vadd.f32 %v688_v38, %v686_v41  ;;  %v740_v35 = vsub.f32 %v724_v25, %v2927_v39  ;;  %v691_v8 = vmul.f32 -0.005, %v679_v51  ;;  %v3458_v38 = vld [vmem:[#allocation18_spill] sm:$0xff]  ;;  %v3460_v51 = vld [vmem:[#allocation8_spill] sm:$0xff] }
 0x1d1   : > { %1283 = vrot.lane.b32.xlu0 %v3455_v59, %s1733_s18  ;;  %1353 = vrot.lane.b32.xlu1 %v2845_v36, %s1735_s29  ;;  %v766_v30 = vmul.f32 -0.005, %v754_v45  ;;  %v751_v62 = vadd.f32 %v747_v16, %v745_v57  ;;  %v808_v33 = vsub.f32 %v3456_v43, %v2483_v19  ;;  %v687_v63 = vadd.f32 %v683_v49, %v681_v58  ;;  %v3461_v58 = vld [vmem:[#allocation13_spill] sm:$0xff] }
 0x1d2   : > { %v1301_v11 = vmul.f32 %v1289_v47, %v1289_v47  ;;  %v756_v17 = vand.u32 2147483647, %v740_v35  ;;  %vm624_vm11 = vcmp.lt.s32.totalorder %v3457_v10, 15  ;;  %v618_v23 = vmul.f32 1.442695, %v616_v60  ;;  %v3459_v47 = vld [vmem:[#allocation19_spill] sm:$0xff] }
 0x1d3   : > { %v656_v29 = vpop.permute.xlu0 %655  ;;  %v728_v53 = vpop.permute.xlu1 %727  ;;  %v853_v41 = vsub.f32 %v3458_v38, %v2501_v44  ;;  %1578 = vpow2.f32 %v695_v34  ;;  %v753_v22 = vadd.f32 %v751_v62, %v749_v20  ;;  %v806_v25 = vsub.f32 %v3459_v47, %v2458_v21  ;;  %vm772_vm3 = vmand %vm624_vm11, %vm3469_vm2 }
 0x1d4   : > { %v3059_v37 = vadd.f32 %v1301_v11, %v1299_v31  ;;  %v669_v7 = vsub.f32 %v656_v29, %v2695_v56  ;;  %v742_v40 = vsub.f32 %v728_v53, %v2664_v1  ;;  %v810_v45 = vsub.f32 %v3460_v51, %v2507_v42  ;;  %vm844_vm1 = vmand %vm624_vm11, %vm351_vm8 }
 0x1d5   : > { %1347 = vrot.lane.b32.xlu0 %v2852_v24, %s1735_s29  ;;  %1357 = vrot.lane.b32.xlu1 %v2859_v15, %s1735_s29  ;;  %v868_v49 = vmul.f32 %v856_v0, %v856_v0  ;;  %v769_v31 = vmul.f32 1.442695, %v766_v30  ;;  %v855_v34 = vsub.f32 %v3461_v58, %v2513_v14  ;;  %v693_v29 = vmul.f32 1.442695, %v691_v8  ;;  %v3462_v0 = vld [vmem:[#allocation21_spill] sm:$0xff]  ;;  %vm1182_vm5 = vmand %vm624_vm11, %vm414_vm15 }
 0x1d6   : > { %v685_v3 = vand.u32 2147483647, %v669_v7  ;;  %v758_v54 = vand.u32 2147483647, %v742_v40  ;;  %v820_v57 = vmul.f32 %v808_v33, %v808_v33  ;;  %1580 = vpow2.f32 %v618_v23 }
 0x1d7   : > { %v722_v9 = vpop.permute.xlu0 %721  ;;  %v1274_v16 = vpop.permute.xlu1 %1273  ;;  %v866_v7 = vmul.f32 %v2999_v2, %v2999_v2  ;;  %v858_v53 = vsub.f32 %v3462_v0, %v2507_v42  ;;  %v765_v40 = vmul.f32 -0.005, %v753_v22  ;;  %v818_v62 = vmul.f32 %v806_v25, %v806_v25 }
 0x1d8   : > { %v3076_v35 = vadd.f32 %v687_v63, %v685_v3  ;;  %v3078_v11 = vadd.f32 %v758_v54, %v756_v17  ;;  %v1292_v60 = vsub.f32 %v1274_v16, %v2507_v42  ;;  %v739_v20 = vsub.f32 %v722_v9, %v2940_v52 }
 0x1d9   : > { %1351 = vrot.lane.b32.xlu0 %v2867_v13, %s1735_s29  ;;  %v822_v43 = vmul.f32 %v810_v45, %v810_v45  ;;  %v865_v38 = vmul.f32 %v853_v41, %v853_v41  ;;  %v872_v8 = vadd.f32 %v868_v49, %v866_v7  ;;  %1582 = vpow2.f32 %v769_v31 }
 0x1da   : > { %v1304_v30 = vmul.f32 %v1292_v60, %v1292_v60  ;;  %1584 = vpow2.f32 %v693_v29  ;;  %v824_v2 = vadd.f32 %v820_v57, %v818_v62  ;;  %v755_v23 = vand.u32 2147483647, %v739_v20  ;;  %v3463_v60 = vld [vmem:[#allocation16_spill] sm:$0xff] }
 0x1db   : > { %v726_v17 = vpop.permute.xlu0 %725  ;;  %v1338_v3 = vpop.permute.xlu1 %1337  ;;  %v867_v9 = vmul.f32 %v855_v34, %v855_v34  ;;  %v870_v22 = vmul.f32 %v858_v53, %v858_v53  ;;  %v615_v47 = vadd.f32 %v2973_v46, %v2991_v6  ;;  %v767_v45 = vmul.f32 1.442695, %v765_v40  ;;  %v3465_v20 = vld [vmem:[#allocation20_spill] sm:$0xff]  ;;  %v3467_v40 = vld [vmem:[#allocation23_spill] sm:$0xff] }
 0x1dc   : > { %v741_v63 = vsub.f32 %v726_v17, %v2673_v27  ;;  %v3092_v33 = vadd.f32 %v3033_v18, %v1304_v30  ;;  %v1360_v25 = vsub.f32 %v1338_v3, %v2458_v21  ;;  %v1577_v51 = vpop.eup %1576  ;;  %v826_v16 = vadd.f32 %v824_v2, %v822_v43  ;;  %v3466_v30 = vld [vmem:[#allocation12_spill] sm:$0xff] }
 0x1dd   : > { %1355 = vrot.lane.b32.xlu0 %v3455_v59, %s1735_s29  ;;  %v930_v58 = vsub.f32 %v3463_v60, %v2483_v19  ;;  %v3464_v29 = vmov 0.0   ;;  %v3109_v46 = vadd.f32 %v2989_v5, %v2995_v4  ;;  %v871_v57 = vadd.f32 %v867_v9, %v865_v38 }
 0x1de   : > { %v757_v54 = vand.u32 2147483647, %v741_v63  ;;  %v628_v34 = vsel %vm624_vm11, 0.00052083336, %v3464_v29  ;;  %v857_v7 = vsub.f32 %v3465_v20, %v2522_v32  ;;  %v874_v0 = vadd.f32 %v872_v8, %v870_v22 }
 0x1df   : > { %v1272_v41 = vpop.permute.xlu0 %1271  ;;  %v1342_v31 = vpop.permute.xlu1 %1341  ;;  %v928_v17 = vsub.f32 %v3466_v30, %v2458_v21  ;;  %v932_v62 = vsub.f32 %v3467_v40, %v2507_v42  ;;  %v1372_v43 = vmul.f32 %v1360_v25, %v1360_v25  ;;  %1586 = vpow2.f32 %v767_v45  ;;  %v3470_v25 = vld [vmem:[#allocation24_spill] sm:$0xff] }
 0x1e0   : > { %v3099_v18 = vadd.f32 %v757_v54, %v755_v23  ;;  %v1291_v49 = vsub.f32 %v1272_v41, %v2522_v32  ;;  %v1362_v6 = vsub.f32 %v1342_v31, %v2483_v19  ;;  %v1579_v2 = vpop.eup %1578  ;;  %v838_v5 = vmul.f32 -0.005, %v826_v16 }
 0x1e1   : > { %v630_v4 = vmul.f32 %v1577_v51, %v615_v47  ;;  %v942_v23 = vmul.f32 %v930_v58, %v930_v58  ;;  %v704_v8 = vmul.f32 %v1579_v2, %v3052_v28  ;;  %v869_v22 = vmul.f32 %v857_v7, %v857_v7 }
 0x1e2   : > { %v1303_v53 = vmul.f32 %v1291_v49, %v1291_v49  ;;  %v1374_v63 = vmul.f32 %v1362_v6, %v1362_v6  ;;  %v929_v47 = vsub.f32 %v3470_v25, %v2513_v14  ;;  %v886_v28 = vmul.f32 -0.005, %v874_v0  ;;  %v3472_v0 = vld [vmem:[#allocation14_spill] sm:$0xff] }
 0x1e3   : > { %v1336_v3 = vpop.permute.xlu0 %1335  ;;  %v732_v38 = vpop.permute.xlu1 %731  ;;  %v940_v51 = vmul.f32 %v928_v17, %v928_v17  ;;  %v944_v45 = vmul.f32 %v932_v62, %v932_v62  ;;  %v841_v60 = vmul.f32 1.442695, %v838_v5  ;;  %v632_v58 = vmul.f32 %v630_v4, %v628_v34  ;;  %v3473_v34 = vld [vmem:[#allocation22_spill] sm:$0xff] }
 0x1e4   : > { %v3119_v19 = vadd.f32 %v3059_v37, %v1303_v53  ;;  %v3122_v54 = vadd.f32 %v1374_v63, %v1372_v43  ;;  %v744_v9 = vsub.f32 %v732_v38, %v2686_v50  ;;  %v701_v37 = vsel %vm3471_vm7, 0.000492126, %v3464_v29  ;;  %v1581_v31 = vpop.eup %1580 }
 0x1e5   : > { %v1359_v41 = vsub.f32 %v1336_v3, %v2501_v44  ;;  %v774_v6 = vsel %vm772_vm3, 0.0005249344, %v3464_v29  ;;  %v946_v53 = vadd.f32 %v942_v23, %v940_v51  ;;  %v706_v30 = vmul.f32 %v704_v8, %v701_v37 }
 0x1e6   : > { %v760_v16 = vand.u32 2147483647, %v744_v9  ;;  %v1583_v63 = vpop.eup %1582  ;;  %v927_v17 = vsub.f32 %v3472_v0, %v2501_v44  ;;  %v941_v62 = vmul.f32 %v929_v47, %v929_v47  ;;  %v931_v4 = vsub.f32 %v3473_v34, %v2522_v32 }
 0x1e7   : > { %v1340_v49 = vpop.permute.xlu0 %1339  ;;  %v796_v7 = vpop.permute.xlu1 %795  ;;  %v1371_v3 = vmul.f32 %v1359_v41, %v1359_v41  ;;  %v948_v38 = vadd.f32 %v946_v53, %v944_v45  ;;  %1588 = vpow2.f32 %v841_v60  ;;  %v708_v47 = vadd.f32 %v706_v30, %v632_v58 }
 0x1e8   : > { %v1361_v20 = vsub.f32 %v1340_v49, %v2513_v14  ;;  %v764_v40 = vadd.f32 %v3078_v11, %v760_v16  ;;  %v812_v43 = vsub.f32 %v796_v7, %v2927_v39  ;;  %v1585_v5 = vpop.eup %1584  ;;  %v3474_v14 = vld [vmem:[#allocation17_spill] sm:$0xff]  ;;  %v889_v7 = vmul.f32 1.442695, %v886_v28 }
 0x1e9   : > { %v837_v9 = vmul.f32 -0.005, %v3474_v14  ;;  %v703_v11 = vmul.f32 %v1585_v5, %v3076_v35  ;;  %v629_v45 = vmul.f32 %v1581_v31, %v3109_v46  ;;  %v773_v58 = vsel %vm3475_vm10, 0.0005249344, %v3464_v29 }
 0x1ea   : > { %v1373_v2 = vmul.f32 %v1361_v20, %v1361_v20  ;;  %v776_v23 = vmul.f32 %v1583_v63, %v764_v40  ;;  %v828_v16 = vand.u32 2147483647, %v812_v43  ;;  %v873_v20 = vadd.f32 %v871_v57, %v869_v22 }
 0x1eb   : > { %v730_v8 = vpop.permute.xlu0 %729  ;;  %v800_v44 = vpop.permute.xlu1 %799  ;;  %v939_v40 = vmul.f32 %v927_v17, %v927_v17  ;;  %v943_v63 = vmul.f32 %v931_v4, %v931_v4  ;;  %v960_v28 = vmul.f32 -0.005, %v948_v38  ;;  %v631_v17 = vmul.f32 0.00052083336, %v629_v45 }
 0x1ec   : > { %v3145_v25 = vadd.f32 %v1373_v2, %v1371_v3  ;;  %v743_v51 = vsub.f32 %v730_v8, %v2695_v56  ;;  %v778_v41 = vmul.f32 %v776_v23, %v774_v6  ;;  %v814_v49 = vsub.f32 %v800_v44, %v2664_v1  ;;  %v1587_v57 = vpop.eup %1586 }
 0x1ed   : > { %v839_v3 = vmul.f32 1.442695, %v837_v9  ;;  %v705_v2 = vmul.f32 %v703_v11, %v701_v37  ;;  %v945_v22 = vadd.f32 %v941_v62, %v939_v40  ;;  %v885_v43 = vmul.f32 -0.005, %v873_v20 }
 0x1ee   : > { %v759_v53 = vand.u32 2147483647, %v743_v51  ;;  %v3150_v60 = vadd.f32 %v778_v41, %v708_v47  ;;  %v830_v35 = vand.u32 2147483647, %v814_v49  ;;  %1590 = vpow2.f32 %v889_v7 }
 0x1ef   : > { %v794_v0 = vpop.permute.xlu0 %793  ;;  %v1346_v30 = vpop.permute.xlu1 %1345  ;;  %v947_v37 = vadd.f32 %v945_v22, %v943_v63  ;;  %v862_v4 = vsub.f32 %v2845_v36, %v2664_v1  ;;  %1592 = vpow2.f32 %v839_v3  ;;  %v963_v8 = vmul.f32 1.442695, %v960_v28 }
 0x1f0   : > { %v763_v6 = vadd.f32 %v3099_v18, %v759_v53  ;;  %v834_v46 = vadd.f32 %v830_v35, %v828_v16  ;;  %v1364_v31 = vsub.f32 %v1346_v30, %v2507_v42  ;;  %v811_v34 = vsub.f32 %v794_v0, %v2940_v52 }
 0x1f1   : > { %v707_v18 = vadd.f32 %v705_v2, %v631_v17  ;;  %v887_v51 = vmul.f32 1.442695, %v885_v43  ;;  %v876_v1 = vand.u32 2147483647, %v860_v61  ;;  %v878_v36 = vand.u32 2147483647, %v862_v4 }
 0x1f2   : > { %v775_v5 = vmul.f32 %v1587_v57, %v763_v6  ;;  %v1376_v14 = vmul.f32 %v1364_v31, %v1364_v31  ;;  %v827_v47 = vand.u32 2147483647, %v811_v34  ;;  %v864_v16 = vsub.f32 %v2859_v15, %v2686_v50  ;;  %v3476_v57 = vld [vmem:[#allocation26_spill] sm:$0xff]  ;;  %v3189_v31 = vld [vmem:[%s1896_s3 + $0x18] sm:$0xff] }
 0x1f3   : > { %v798_v9 = vpop.permute.xlu0 %797  ;;  %v804_v38 = vpop.permute.xlu1 %803  ;;  %v959_v20 = vmul.f32 -0.005, %v947_v37  ;;  %1594 = vpow2.f32 %v963_v8  ;;  %v859_v55 = vsub.f32 %v2852_v24, %v2940_v52  ;;  %v846_v63 = vsel %vm844_vm1, 0.0005249344, %v3464_v29 }
 0x1f4   : > { %v777_v23 = vmul.f32 %v775_v5, %v773_v58  ;;  %v813_v62 = vsub.f32 %v798_v9, %v2673_v27  ;;  %v3162_v42 = vadd.f32 %v3122_v54, %v1376_v14  ;;  %v816_v11 = vsub.f32 %v804_v38, %v2686_v50  ;;  %v1589_v40 = vpop.eup %1588 }
 0x1f5   : > { %1596 = vpow2.f32 %v887_v51  ;;  %v861_v50 = vsub.f32 %v2867_v13, %v2673_v27  ;;  %v882_v0 = vadd.f32 %v878_v36, %v876_v1  ;;  %v880_v3 = vand.u32 2147483647, %v864_v16  ;;  %v3477_v16 = vld [vmem:[#allocation9_spill] sm:$0xff] }
 0x1f6   : > { %v3165_v44 = vadd.f32 %v777_v23, %v707_v18  ;;  %v829_v41 = vand.u32 2147483647, %v813_v62  ;;  %v832_v54 = vand.u32 2147483647, %v816_v11  ;;  %v961_v58 = vmul.f32 1.442695, %v959_v20 }
 0x1f7   : > { %v1344_v49 = vpop.permute.xlu0 %1343  ;;  %v918_v53 = vpop.permute.xlu1 %917  ;;  %v1032_v22 = vmul.f32 -0.005, %v3476_v57  ;;  %v875_v13 = vand.u32 2147483647, %v859_v55  ;;  %v877_v43 = vand.u32 2147483647, %v861_v50  ;;  %v863_v17 = vsub.f32 %v3455_v59, %v2695_v56 }
 0x1f8   : > { %v833_v7 = vadd.f32 %v829_v41, %v827_v47  ;;  %v1363_v45 = vsub.f32 %v1344_v49, %v2522_v32  ;;  %v836_v61 = vadd.f32 %v834_v46, %v832_v54  ;;  %v934_v15 = vsub.f32 %v918_v53, %v2927_v39  ;;  %v3200_v59 = vld [vmem:[%s1896_s3 + $0x28] sm:$0xff] }
 0x1f9   : > { %1598 = vpow2.f32 %v961_v58  ;;  %vm892_vm0 = vcmp.lt.s32.totalorder %v3457_v10, 14  ;;  %v1035_v62 = vmul.f32 1.442695, %v1032_v22  ;;  %v845_v38 = vsel %vm351_vm8, 0.0005249344, %v3464_v29  ;;  %v3219_v22 = vld [vmem:[%s1896_s3 + $0x20] sm:$0xff] }
 0x1fa   : > { %v1375_v35 = vmul.f32 %v1363_v45, %v1363_v45  ;;  %v848_v32 = vmul.f32 %v1589_v40, %v836_v61  ;;  %v950_v46 = vand.u32 2147483647, %v934_v15  ;;  %v881_v8 = vadd.f32 %v877_v43, %v875_v13  ;;  %vm1038_vm14 = vmand %vm892_vm0, %vm3480_vm13 }
 0x1fb   : > { %v802_v2 = vpop.permute.xlu0 %801  ;;  %v922_v30 = vpop.permute.xlu1 %921  ;;  %v879_v11 = vand.u32 2147483647, %v863_v17  ;;  %v896_v47 = vsel %vm892_vm0, 0.00055803574, %v3464_v29  ;;  %v1031_v54 = vmul.f32 -0.005, %v3477_v16  ;;  %1600 = vpow2.f32 %v1035_v62  ;;  %vm1110_vm4 = vmand %vm892_vm0, %vm351_vm8 }
 0x1fc   : > { %v3184_v6 = vadd.f32 %v3145_v25, %v1375_v35  ;;  %v815_v24 = vsub.f32 %v802_v2, %v2695_v56  ;;  %v850_v28 = vmul.f32 %v848_v32, %v846_v63  ;;  %v936_v27 = vsub.f32 %v922_v30, %v3189_v31  ;;  %v1591_v14 = vpop.eup %1590  ;;  %vm1326_vm6 = vmand %vm892_vm0, %vm414_vm15 }
 0x1fd   : > { %v884_v25 = vadd.f32 %v882_v0, %v880_v3  ;;  %v1593_v23 = vpop.eup %1592  ;;  %v883_v15 = vadd.f32 %v881_v8, %v879_v11  ;;  %v967_v63 = vsel %vm414_vm15, 0.0004960318, %v3464_v29  ;;  %v1033_v58 = vmul.f32 1.442695, %v1031_v54  ;;  %v3479_v8 = vld [vmem:[#allocation27_spill] sm:$0xff] }
 0x1fe   : > { %v831_v5 = vand.u32 2147483647, %v815_v24  ;;  %v852_v34 = vadd.f32 %v850_v28, %v3150_v60  ;;  %v952_v37 = vand.u32 2147483647, %v936_v27  ;;  %v3478_v24 = vld [vmem:[#allocation28_spill] sm:$0xff] }
 0x1ff   : > { %v916_v4 = vpop.permute.xlu0 %915  ;;  %v926_v18 = vpop.permute.xlu1 %925  ;;  %v898_v41 = vmul.f32 %v1591_v14, %v884_v25  ;;  %v1104_v30 = vmul.f32 -0.005, %v3478_v24  ;;  %1602 = vpow2.f32 %v1033_v58  ;;  %v1103_v11 = vmul.f32 -0.005, %v3479_v8 }
 0x200   : > { %v835_v9 = vadd.f32 %v833_v7, %v831_v5  ;;  %v956_v56 = vadd.f32 %v952_v37, %v950_v46  ;;  %v938_v60 = vsub.f32 %v926_v18, %v3200_v59  ;;  %v933_v20 = vsub.f32 %v916_v4, %v2940_v52  ;;  %v3209_v7 = vld [vmem:[%s1896_s3 + $0x10] sm:$0xff]  ;;  %v1595_v61 = vpop.eup %1594 }
 0x201   : > { %v900_v3 = vmul.f32 %v898_v41, %v896_v47  ;;  %v1107_v62 = vmul.f32 1.442695, %v1104_v30 }
 0x202   : > { %v847_v51 = vmul.f32 %v1593_v23, %v835_v9  ;;  %v954_v1 = vand.u32 2147483647, %v938_v60  ;;  %v1597_v0 = vpop.eup %1596  ;;  %v949_v57 = vand.u32 2147483647, %v933_v20 }
 0x203   : > { %v920_v36 = vpop.permute.xlu0 %919  ;;  %v990_v53 = vpop.permute.xlu1 %989  ;;  %v902_v27 = vadd.f32 %v900_v3, %v852_v34  ;;  %v897_v5 = vmul.f32 %v1597_v0, %v883_v15  ;;  %1604 = vpow2.f32 %v1107_v62  ;;  %v1176_v3 = vmul.f32 -0.005, %v2948_v12 }
 0x204   : > { %v849_v49 = vmul.f32 %v847_v51, %v845_v38  ;;  %v935_v45 = vsub.f32 %v920_v36, %v3209_v7  ;;  %v958_v40 = vadd.f32 %v956_v56, %v954_v1  ;;  %v1006_v55 = vsub.f32 %v990_v53, %v2927_v39 }
 0x205   : > { %v899_v60 = vmul.f32 0.00055803574, %v897_v5 }
 0x206   : > { %v851_v50 = vadd.f32 %v849_v49, %v3165_v44  ;;  %v951_v35 = vand.u32 2147483647, %v935_v45  ;;  %v970_v32 = vmul.f32 %v1595_v61, %v958_v40  ;;  %v1022_v13 = vand.u32 2147483647, %v1006_v55  ;;  %v1599_v23 = vpop.eup %1598 }
 0x207   : > { %v924_v2 = vpop.permute.xlu0 %923  ;;  %v994_v46 = vpop.permute.xlu1 %993  ;;  %v1040_v40 = vsel %vm1038_vm14, 0.0005624297, %v3464_v29 }
 0x208   : > { %v937_v28 = vsub.f32 %v924_v2, %v3219_v22  ;;  %v972_v44 = vmul.f32 %v970_v32, %v967_v63  ;;  %v1008_v43 = vsub.f32 %v994_v46, %v3189_v31  ;;  %v955_v17 = vadd.f32 %v951_v35, %v949_v57  ;;  %v1601_v45 = vpop.eup %1600 }
 0x209   : > { %v901_v41 = vadd.f32 %v899_v60, %v851_v50  ;;  %v1105_v35 = vmul.f32 1.442695, %v1103_v11  ;;  %v1112_v11 = vsel %vm1110_vm4, 0.0005624297, %v3464_v29 }
 0x20a   : > { %v953_v25 = vand.u32 2147483647, %v937_v28  ;;  %v974_v37 = vadd.f32 %v972_v44, %v902_v27  ;;  %v1024_v4 = vand.u32 2147483647, %v1008_v43  ;;  %v1179_v43 = vmul.f32 1.442695, %v1176_v3 }
 0x20b   : > { %v988_v14 = vpop.permute.xlu0 %987  ;;  %v998_v18 = vpop.permute.xlu1 %997  ;;  %1606 = vpow2.f32 %v1105_v35 }
 0x20c   : > { %v957_v9 = vadd.f32 %v955_v17, %v953_v25  ;;  %v1028_v38 = vadd.f32 %v1024_v4, %v1022_v13  ;;  %v1010_v56 = vsub.f32 %v998_v18, %v3200_v59  ;;  %v1005_v36 = vsub.f32 %v988_v14, %v2940_v52  ;;  %v1603_v13 = vpop.eup %1602  ;;  %v3482_v14 = vld [vmem:[#allocation29_spill] sm:$0xff] }
 0x20d   : > { %v1039_v17 = vsel %vm3481_vm9, 0.0005624297, %v3464_v29  ;;  %1608 = vpow2.f32 %v1179_v43 }
 0x20e   : > { %v969_v34 = vmul.f32 %v1599_v23, %v957_v9  ;;  %v1026_v51 = vand.u32 2147483647, %v1010_v56  ;;  %v1021_v0 = vand.u32 2147483647, %v1005_v36  ;;  %v1175_v9 = vmul.f32 -0.005, %v3482_v14 }
 0x20f   : > { %v992_v47 = vpop.permute.xlu0 %991  ;;  %v1062_v54 = vpop.permute.xlu1 %1061 }
 0x210   : > { %v971_v1 = vmul.f32 %v969_v34, %v967_v63  ;;  %v1007_v16 = vsub.f32 %v992_v47, %v3209_v7  ;;  %v1030_v49 = vadd.f32 %v1028_v38, %v1026_v51  ;;  %v1078_v20 = vsub.f32 %v1062_v54, %v2927_v39  ;;  %v1605_v34 = vpop.eup %1604 }
 0x212   : > { %v973_v53 = vadd.f32 %v971_v1, %v901_v41  ;;  %v1023_v55 = vand.u32 2147483647, %v1007_v16  ;;  %v1042_v61 = vmul.f32 %v1601_v45, %v1030_v49  ;;  %v1094_v2 = vand.u32 2147483647, %v1078_v20 }
 0x213   : > { %v996_v15 = vpop.permute.xlu0 %995  ;;  %v1066_v63 = vpop.permute.xlu1 %1065  ;;  %v1177_v1 = vmul.f32 1.442695, %v1175_v9  ;;  %v1248_v49 = vmul.f32 -0.005, %v3005_v26 }
 0x214   : > { %v1009_v50 = vsub.f32 %v996_v15, %v3219_v22  ;;  %v1044_v32 = vmul.f32 %v1042_v61, %v1040_v40  ;;  %v1080_v58 = vsub.f32 %v1066_v63, %v3189_v31  ;;  %v1027_v24 = vadd.f32 %v1023_v55, %v1021_v0 }
 0x215   : > { %1610 = vpow2.f32 %v1177_v1  ;;  %v1251_v3 = vmul.f32 1.442695, %v1248_v49 }
 0x216   : > { %v1025_v30 = vand.u32 2147483647, %v1009_v50  ;;  %v1046_v57 = vadd.f32 %v1044_v32, %v974_v37  ;;  %v1096_v28 = vand.u32 2147483647, %v1080_v58  ;;  %v1111_v32 = vsel %vm351_vm8, 0.0005624297, %v3464_v29  ;;  %vm1254_vm8 = vmand %vm624_vm11, %vm320_vm12 }
 0x217   : > { %v1060_v46 = vpop.permute.xlu0 %1059  ;;  %v1070_v44 = vpop.permute.xlu1 %1069  ;;  %1612 = vpow2.f32 %v1251_v3  ;;  %v1256_v3 = vsel %vm1254_vm8, 0.00052910054, %v3464_v29  ;;  %vm1398_vm11 = vmand %vm892_vm0, %vm320_vm12 }
 0x218   : > { %v1029_v27 = vadd.f32 %v1027_v24, %v1025_v30  ;;  %v1100_v5 = vadd.f32 %v1096_v28, %v1094_v2  ;;  %v1082_v12 = vsub.f32 %v1070_v44, %v3200_v59  ;;  %v1077_v23 = vsub.f32 %v1060_v46, %v2940_v52  ;;  %v1607_v63 = vpop.eup %1606 }
 0x21a   : > { %v1041_v25 = vmul.f32 %v1603_v13, %v1029_v27  ;;  %v1098_v37 = vand.u32 2147483647, %v1082_v12  ;;  %v1093_v36 = vand.u32 2147483647, %v1077_v23  ;;  %v1184_v12 = vsel %vm1182_vm5, 0.00052910054, %v3464_v29 }
 0x21b   : > { %v1064_v4 = vpop.permute.xlu0 %1063  ;;  %v1134_v38 = vpop.permute.xlu1 %1133 }
 0x21c   : > { %v1043_v18 = vmul.f32 %v1041_v25, %v1039_v17  ;;  %v1079_v62 = vsub.f32 %v1064_v4, %v3209_v7  ;;  %v1102_v56 = vadd.f32 %v1100_v5, %v1098_v37  ;;  %v1150_v60 = vsub.f32 %v1134_v38, %v2927_v39  ;;  %v1609_v17 = vpop.eup %1608 }
 0x21e   : > { %v1045_v8 = vadd.f32 %v1043_v18, %v973_v53  ;;  %v1095_v51 = vand.u32 2147483647, %v1079_v62  ;;  %v1114_v47 = vmul.f32 %v1605_v34, %v1102_v56  ;;  %v1166_v45 = vand.u32 2147483647, %v1150_v60 }
 0x21f   : > { %v1068_v41 = vpop.permute.xlu0 %1067  ;;  %v1138_v54 = vpop.permute.xlu1 %1137 }
 0x220   : > { %v1081_v16 = vsub.f32 %v1068_v41, %v3219_v22  ;;  %v1116_v20 = vmul.f32 %v1114_v47, %v1112_v11  ;;  %v1152_v40 = vsub.f32 %v1138_v54, %v3189_v31  ;;  %v1099_v55 = vadd.f32 %v1095_v51, %v1093_v36 }
 0x222   : > { %v1097_v61 = vand.u32 2147483647, %v1081_v16  ;;  %v1118_v15 = vadd.f32 %v1116_v20, %v1046_v57  ;;  %v1168_v53 = vand.u32 2147483647, %v1152_v40  ;;  %v1247_v57 = vmul.f32 -0.005, %v3031_v48  ;;  %v1611_v47 = vpop.eup %1610 }
 0x223   : > { %v1132_v35 = vpop.permute.xlu0 %1131  ;;  %v1142_v50 = vpop.permute.xlu1 %1141  ;;  %v1319_v20 = vmul.f32 -0.005, %v3119_v19  ;;  %v3278_v40 = vld [vmem:[%s1896_s3] sm:$0xff] }
 0x224   : > { %v1101_v0 = vadd.f32 %v1099_v55, %v1097_v61  ;;  %v1172_v2 = vadd.f32 %v1168_v53, %v1166_v45  ;;  %v1154_v26 = vsub.f32 %v1142_v50, %v3200_v59  ;;  %v1149_v46 = vsub.f32 %v1132_v35, %v2940_v52  ;;  %v1631_v35 = vld [vmem:[%s1896_s3 + $0x8] sm:$0xff]  ;;  %v1613_v50 = vpop.eup %1612 }
 0x225   : > { %v1249_v14 = vmul.f32 1.442695, %v1247_v57  ;;  %v1320_v52 = vmul.f32 -0.005, %v3092_v33  ;;  %v1183_v33 = vsel %vm414_vm15, 0.00052910054, %v3464_v29 }
 0x226   : > { %v1113_v58 = vmul.f32 %v1607_v63, %v1101_v0  ;;  %v1170_v24 = vand.u32 2147483647, %v1154_v26  ;;  %v1165_v9 = vand.u32 2147483647, %v1149_v46  ;;  %v1321_v19 = vmul.f32 1.442695, %v1319_v20 }
 0x227   : > { %v1136_v30 = vpop.permute.xlu0 %1135  ;;  %v1206_v44 = vpop.permute.xlu1 %1205  ;;  %1614 = vpow2.f32 %v1249_v14  ;;  %v1323_v41 = vmul.f32 1.442695, %v1320_v52  ;;  %v1392_v57 = vmul.f32 -0.005, %v3162_v42  ;;  %v1255_v14 = vsel %vm320_vm12, 0.00052910054, %v3464_v29 }
 0x228   : > { %v1115_v28 = vmul.f32 %v1113_v58, %v1111_v32  ;;  %v1151_v27 = vsub.f32 %v1136_v30, %v3209_v7  ;;  %v1174_v13 = vadd.f32 %v1172_v2, %v1170_v24  ;;  %v1222_v43 = vsub.f32 %v1206_v44, %v2927_v39 }
 0x229   : > { %1616 = vpow2.f32 %v1323_v41 }
 0x22a   : > { %v1117_v5 = vadd.f32 %v1115_v28, %v1045_v8  ;;  %v1167_v25 = vand.u32 2147483647, %v1151_v27  ;;  %v1186_v37 = vmul.f32 %v1609_v17, %v1174_v13  ;;  %v1238_v62 = vand.u32 2147483647, %v1222_v43 }
 0x22b   : > { %v1140_v4 = vpop.permute.xlu0 %1139  ;;  %v1210_v18 = vpop.permute.xlu1 %1209  ;;  %1618 = vpow2.f32 %v1321_v19 }
 0x22c   : > { %v1153_v48 = vsub.f32 %v1140_v4, %v3219_v22  ;;  %v1188_v23 = vmul.f32 %v1186_v37, %v1184_v12  ;;  %v1224_v38 = vsub.f32 %v1210_v18, %v3189_v31  ;;  %v1171_v56 = vadd.f32 %v1167_v25, %v1165_v9 }
 0x22d   : > { %v1395_v4 = vmul.f32 1.442695, %v1392_v57 }
 0x22e   : > { %v1169_v39 = vand.u32 2147483647, %v1153_v48  ;;  %v1190_v60 = vadd.f32 %v1188_v23, %v1118_v15  ;;  %v1240_v34 = vand.u32 2147483647, %v1224_v38  ;;  %v1391_v23 = vmul.f32 -0.005, %v3184_v6 }
 0x22f   : > { %v1204_v8 = vpop.permute.xlu0 %1203  ;;  %v1214_v51 = vpop.permute.xlu1 %1213  ;;  %1620 = vpow2.f32 %v1395_v4 }
 0x230   : > { %v1173_v11 = vadd.f32 %v1171_v56, %v1169_v39  ;;  %v1244_v1 = vadd.f32 %v1240_v34, %v1238_v62  ;;  %v1226_v36 = vsub.f32 %v1214_v51, %v3200_v59  ;;  %v1221_v55 = vsub.f32 %v1204_v8, %v3278_v40 }
 0x231   : > { %v1328_v51 = vsel %vm1326_vm6, 0.00056689343, %v3464_v29 }
 0x232   : > { %v1185_v16 = vmul.f32 %v1611_v47, %v1173_v11  ;;  %v1242_v54 = vand.u32 2147483647, %v1226_v36  ;;  %v1237_v58 = vand.u32 2147483647, %v1221_v55 }
 0x233   : > { %v1208_v49 = vpop.permute.xlu0 %1207  ;;  %v1278_v15 = vpop.permute.xlu1 %1277 }
 0x234   : > { %v1187_v45 = vmul.f32 %v1185_v16, %v1183_v33  ;;  %v1223_v61 = vsub.f32 %v1208_v49, %v3209_v7  ;;  %v1246_v53 = vadd.f32 %v1244_v1, %v1242_v54  ;;  %v1294_v0 = vsub.f32 %v1278_v15, %v1631_v35  ;;  %v1615_v37 = vpop.eup %1614 }
 0x235   : > { %v1393_v1 = vmul.f32 1.442695, %v1391_v23 }
 0x236   : > { %v1189_v63 = vadd.f32 %v1187_v45, %v1117_v5  ;;  %v1239_v32 = vand.u32 2147483647, %v1223_v61  ;;  %v1258_v2 = vmul.f32 %v1613_v50, %v1246_v53  ;;  %v1310_v46 = vand.u32 2147483647, %v1294_v0  ;;  %v1617_v8 = vpop.eup %1616 }
 0x237   : > { %v1212_v26 = vpop.permute.xlu0 %1211  ;;  %v1282_v30 = vpop.permute.xlu1 %1281  ;;  %1622 = vpow2.f32 %v1393_v1 }
 0x238   : > { %v1225_v24 = vsub.f32 %v1212_v26, %v3219_v22  ;;  %v1260_v28 = vmul.f32 %v1258_v2, %v1256_v3  ;;  %v1296_v27 = vsub.f32 %v1282_v30, %v3189_v31  ;;  %v1243_v44 = vadd.f32 %v1239_v32, %v1237_v58  ;;  %v1619_v50 = vpop.eup %1618 }
 0x23a   : > { %v1241_v13 = vand.u32 2147483647, %v1225_v24  ;;  %v1262_v43 = vadd.f32 %v1260_v28, %v1190_v60  ;;  %v1312_v17 = vand.u32 2147483647, %v1296_v27  ;;  %v1400_v28 = vsel %vm1398_vm11, 0.00056689343, %v3464_v29 }
 0x23b   : > { %v1276_v5 = vpop.permute.xlu0 %1275  ;;  %v1286_v25 = vpop.permute.xlu1 %1285 }
 0x23c   : > { %v1245_v12 = vadd.f32 %v1243_v44, %v1241_v13  ;;  %v1316_v9 = vadd.f32 %v1312_v17, %v1310_v46  ;;  %v1298_v42 = vsub.f32 %v1286_v25, %v3200_v59  ;;  %v1293_v38 = vsub.f32 %v1276_v5, %v3278_v40  ;;  %v1621_v57 = vpop.eup %1620 }
 0x23e   : > { %v1257_v48 = vmul.f32 %v1615_v37, %v1245_v12  ;;  %v1314_v18 = vand.u32 2147483647, %v1298_v42  ;;  %v1309_v36 = vand.u32 2147483647, %v1293_v38 }
 0x23f   : > { %v1280_v52 = vpop.permute.xlu0 %1279  ;;  %v1350_v39 = vpop.permute.xlu1 %1349 }
 0x240   : > { %v1259_v62 = vmul.f32 %v1257_v48, %v1255_v14  ;;  %v1295_v56 = vsub.f32 %v1280_v52, %v3209_v7  ;;  %v1318_v60 = vadd.f32 %v1316_v9, %v1314_v18  ;;  %v1366_v34 = vsub.f32 %v1350_v39, %v1631_v35 }
 0x242   : > { %v1261_v11 = vadd.f32 %v1259_v62, %v1189_v63  ;;  %v1311_v47 = vand.u32 2147483647, %v1295_v56  ;;  %v1330_v41 = vmul.f32 %v1617_v8, %v1318_v60  ;;  %v1382_v49 = vand.u32 2147483647, %v1366_v34 }
 0x243   : > { %v1284_v33 = vpop.permute.xlu0 %1283  ;;  %v1354_v16 = vpop.permute.xlu1 %1353  ;;  %v1327_v63 = vsel %vm414_vm15, 0.00056689343, %v3464_v29 }
 0x244   : > { %v1297_v6 = vsub.f32 %v1284_v33, %v3219_v22  ;;  %v1332_v54 = vmul.f32 %v1330_v41, %v1328_v51  ;;  %v1368_v20 = vsub.f32 %v1354_v16, %v3189_v31  ;;  %v1315_v45 = vadd.f32 %v1311_v47, %v1309_v36 }
 0x246   : > { %v1313_v55 = vand.u32 2147483647, %v1297_v6  ;;  %v1384_v61 = vand.u32 2147483647, %v1368_v20  ;;  %v1334_v53 = vadd.f32 %v1332_v54, %v1262_v43 }
 0x247   : > { %v1348_v15 = vpop.permute.xlu0 %1347  ;;  %v1358_v0 = vpop.permute.xlu1 %1357 }
 0x248   : > { %v1317_v35 = vadd.f32 %v1315_v45, %v1313_v55  ;;  %v1388_v3 = vadd.f32 %v1384_v61, %v1382_v49  ;;  %v1370_v32 = vsub.f32 %v1358_v0, %v3200_v59  ;;  %v1365_v58 = vsub.f32 %v1348_v15, %v3278_v40  ;;  %v1623_v40 = vpop.eup %1622 }
 0x24a   : > { %v1329_v2 = vmul.f32 %v1619_v50, %v1317_v35  ;;  %v1386_v31 = vand.u32 2147483647, %v1370_v32  ;;  %v1381_v13 = vand.u32 2147483647, %v1365_v58 }
 0x24b   : > { %v1352_v26 = vpop.permute.xlu0 %1351 }
 0x24c   : > { %v1331_v19 = vmul.f32 %v1329_v2, %v1327_v63  ;;  %v1367_v24 = vsub.f32 %v1352_v26, %v3209_v7  ;;  %v1390_v30 = vadd.f32 %v1388_v3, %v1386_v31  ;;  %v1399_v7 = vsel %vm320_vm12, 0.00056689343, %v3464_v29 }
 0x24e   : > { %v1383_v46 = vand.u32 2147483647, %v1367_v24  ;;  %v1333_v27 = vadd.f32 %v1331_v19, %v1261_v11  ;;  %v1402_v59 = vmul.f32 %v1621_v57, %v1390_v30 }
 0x24f   : > { %v1356_v44 = vpop.permute.xlu0 %1355 }
 0x250   : > { %v1369_v43 = vsub.f32 %v1356_v44, %v3219_v22  ;;  %v1404_v10 = vmul.f32 %v1402_v59, %v1400_v28  ;;  %v1387_v17 = vadd.f32 %v1383_v46, %v1381_v13 }
 0x252   : > { %v1385_v5 = vand.u32 2147483647, %v1369_v43  ;;  %v1406_v12 = vadd.f32 %v1404_v10, %v1334_v53 }
 0x254   : > { %v1389_v25 = vadd.f32 %v1387_v17, %v1385_v5 }
 0x256   : > { %v1401_v37 = vmul.f32 %v1623_v40, %v1389_v25 }
 0x258   : > { %v1403_v4 = vmul.f32 %v1401_v37, %v1399_v7 }
 0x25a   : > { %v1405_v14 = vadd.f32 %v1403_v4, %v1333_v27 }
 0x25c   : > { %v1407_v9 = vadd.f32 %v1406_v12, %v1405_v14 }
 0x25e   : > { %1408 = vadd.xlane.f32.xlu0 %v1407_v9 }
 0x2e7   : > { %v1409_v42 = vpop.xlane.xlu0 %1408 }
 0x2e8   : > { %v1410_v48 = vrot.slane %v1409_v42, 4 }
 0x2ea   : > { %v1411_v22 = vadd.f32 %v1410_v48, %v1409_v42 }
 0x2ec   : > { %v1412_v18 = vrot.slane %v1411_v22, 2 }
 0x2ee   : > { %v1413_v52 = vadd.f32 %v1412_v18, %v1411_v22 }
 0x2f0   : > { %v1414_v23 = vrot.slane %v1413_v52, 1 }
 0x2f2   : > { %v1415_v62 = vadd.f32 %v1414_v23, %v1413_v52 }
 0x2f4   : > { %1521 = vpush %v1415_v62 }
 0x325   : > { %s1522_s12 = spop %1521 }
 0x326   : > { %v1417_v29 = vstv %s1522_s12 }
 0x327   : > { %1418 = vst [vmem:[%s201_s27] sm:$0xff] %v1417_v29 }
 0x328 PF: > { %p15_p8 = scmp.ge.s32.totalorder %s1776_s14, 4   ;;  %s3483_s9 = smov %s1718_s10 }
 0x329   : > { %s3484_s10 = smov %s1722_s11  ;;  %s3485_s11 = smov %s1786_s17 }
 0x32a   : > { %s3486_s12 = smov %s1776_s14  ;;  %17 = sbr.rel (!%p15_p8) target bundleno = 5 (0x5), region = 81 }
 0x32f   :  { %1438 = vsyncpa [#allocation3], 1 }
 0x330   :  { %1440 = vsyncpa [#allocation3 + $0x1], 1 }
 0x331   :  { %1441 = vsyncpa [#allocation5], 1 }
 0x332   :  { %1443 = vsyncpa [#allocation5 + $0x1], 1 }

</bundles_post_ra>
